<compile_context>
chip_gen: v7x
topology: tpu7x:2x2x1
jax: 0.10.0
libtpu: 0.0.40
codegen_flags: <defaults>
</compile_context>

<pallas_src>
import functools

import jax
import jax.numpy as jnp
from jax import lax
from jax.experimental import pallas as pl
from jax.experimental.pallas import tpu as pltpu


def attention_block_kernel(x_ref, wqkv_ref, bqkv_ref, wo_ref, bo_ref, o_ref,
                           k_sc, v_sc, *, n_valid):
    # x_ref   : (HWp, Cp) bf16 raw (un-normalized) padded input tokens for this batch element
    # wqkv_ref: (Cp, 3*Cp) bf16 fused, pre-transposed QKV weights (BN scale/shift and C^-0.5
    #           already folded in); columns [0:Cp]=Q, [Cp:2Cp]=K, [2Cp:3Cp]=V
    # bqkv_ref: (1, 3*Cp) f32 fused effective biases
    # wo_ref  : (Cp, Cp) bf16 pre-transposed output-projection weight
    # bo_ref  : (1, Cp)  f32 output-projection bias
    # o_ref   : (TQ, Cp) bf16 output query tile
    # k_sc/v_sc: (HWp, Cp) bf16 VMEM scratch holding K / V for the whole batch element
    # n_valid : static Python int — number of real (unpadded) tokens
    Cp = o_ref.shape[-1]
    TQ = o_ref.shape[0]
    qi = pl.program_id(1)

    # Project K and V for the whole batch element once per b (query-tile 0), keep resident.
    # Two separate bf16 dots writing straight into the bf16 scratch (no fused f32 temp).
    @pl.when(qi == 0)
    def _():
        x_full = x_ref[...]                                                   # (HWp, Cp) bf16
        k_sc[...] = (jnp.dot(x_full, wqkv_ref[:, Cp:2 * Cp],
                             preferred_element_type=jnp.float32)
                     + bqkv_ref[:, Cp:2 * Cp]).astype(jnp.bfloat16)
        v_sc[...] = (jnp.dot(x_full, wqkv_ref[:, 2 * Cp:],
                             preferred_element_type=jnp.float32)
                     + bqkv_ref[:, 2 * Cp:]).astype(jnp.bfloat16)

    # Current query tile of the raw input (also used for the residual).
    start = pl.multiple_of(qi * TQ, TQ)
    x_tile = x_ref[pl.ds(start, TQ), :]                                       # (TQ, Cp) bf16

    # Q projection (BN + C^-0.5 already folded into the weights/bias), bf16 MXU, f32 acc.
    q = (jnp.dot(x_tile, wqkv_ref[:, :Cp], preferred_element_type=jnp.float32)
         + bqkv_ref[:, :Cp]).astype(jnp.bfloat16)                             # (TQ, Cp)

    # Scores: contract on the last dim of both (no explicit k transpose), bf16 MXU inputs,
    # f32 accumulation.
    s = lax.dot_general(q, k_sc[...], (((1,), (1,)), ((), ())),
                        preferred_element_type=jnp.float32)                   # (TQ, HWp) f32

    # Mask padded key columns (only traced when the token axis was actually padded).
    if n_valid < s.shape[1]:
        col = lax.broadcasted_iota(jnp.int32, s.shape, 1)
        s = jnp.where(col < n_valid, s, -1e30)

    # Numerically-stable softmax along keys: max-subtract in f32, exp in bf16 (EUP bf16 on
    # v6e/v7x), row-sum in f32, EUP approx reciprocal.
    s = s - jnp.max(s, axis=-1, keepdims=True)
    p = jnp.exp(s.astype(jnp.bfloat16))                                       # (TQ, HWp) bf16
    denom = jnp.sum(p, axis=-1, keepdims=True, dtype=jnp.float32)             # (TQ, 1) f32
    attn = p * pl.reciprocal(denom, approx=True).astype(jnp.bfloat16)         # (TQ, HWp) bf16

    # Attention-weighted values (bf16 MXU inputs, f32 accumulation).
    out = jnp.dot(attn, v_sc[...], preferred_element_type=jnp.float32)        # (TQ, Cp) f32

    # Output projection (pre-transposed bf16 weight) + bias + residual with the raw tile.
    o_ref[...] = (jnp.dot(out.astype(jnp.bfloat16), wo_ref[...],
                          preferred_element_type=jnp.float32)
                  + bo_ref[...] + x_tile.astype(jnp.float32)).astype(jnp.bfloat16)


def _pick_tiles(hw, target=256):
    """Pick a query tile TQ (multiple of 8) and padded token count HWp (multiple of TQ).

    Prefers a TQ that divides HW exactly (no padding / masking). If HW has no multiple-of-8
    divisor <= target, HW is padded up to a multiple of `target` and the kernel masks the
    padded key columns — this replaces the old TQ=HW fallback that could blow VMEM.
    """
    if hw <= target:
        tq = ((hw + 7) // 8) * 8
        return tq, tq
    for tq in range(target, 7, -8):
        if hw % tq == 0:
            return tq, hw
    hwp = ((hw + target - 1) // target) * target
    return target, hwp


def _vmem_limit_bytes():
    """7/8 of physical VMEM, capped at 112 MiB (safe on v5e/v6e/v7x)."""
    try:
        cap = int(pltpu.get_tpu_info().vmem_capacity_bytes)
    except Exception:
        cap = 64 * 1024 * 1024
    return int(min(cap * 7 // 8, 112 * 1024 * 1024))


def attention_block_forward(x_nchw, params):
    """x_nchw: (B, C, H, W) float32. Returns (B, C, H, W) float32."""
    B, C, H, W = x_nchw.shape
    HW = H * W
    Cp = ((C + 127) // 128) * 128           # channels padded to a multiple of 128 (lane-dense)
    TQ, HWp = _pick_tiles(HW, target=256)   # query tile / padded token count

    # --- BatchNorm batch statistics (training-mode forward, biased variance like PyTorch) ---
    eps = 1e-5
    mean = jnp.mean(x_nchw, axis=(0, 2, 3))                   # (C,)
    var = jnp.var(x_nchw, axis=(0, 2, 3))                     # (C,)
    scale = params["bn_gamma"] * lax.rsqrt(var + eps)         # (C,)
    shift = params["bn_beta"] - mean * scale                  # (C,)

    # --- fold BN and the C^-0.5 score scale into fused, pre-transposed QKV weights ---
    wqkv = params["w_qkv"].reshape(3 * C, C)                  # (3C, C) = [Wq; Wk; Wv]
    bqkv = params["b_qkv"]                                    # (3C,)
    wq, wk, wv = wqkv[:C], wqkv[C:2 * C], wqkv[2 * C:]
    bq, bk, bv = bqkv[:C], bqkv[C:2 * C], bqkv[2 * C:]
    inv_sqrt_c = float(C) ** -0.5

    def fold(w_t, b):
        # xn @ w_t + b with xn = x*scale + shift  ==  x @ (scale[:,None]*w_t) + (shift@w_t + b)
        return scale[:, None] * w_t, shift @ w_t + b

    wq_eff, bq_eff = fold(wq.T * inv_sqrt_c, bq * inv_sqrt_c)
    wk_eff, bk_eff = fold(wk.T, bk)
    wv_eff, bv_eff = fold(wv.T, bv)

    # Weights in bf16 (half the DMA / VMEM), biases stay f32 (added to f32 accumulators).
    W_qkv = jnp.zeros((Cp, 3 * Cp), jnp.float32)
    W_qkv = (W_qkv.at[:C, 0:C].set(wq_eff)
                  .at[:C, Cp:Cp + C].set(wk_eff)
                  .at[:C, 2 * Cp:2 * Cp + C].set(wv_eff)).astype(jnp.bfloat16)
    B_qkv = jnp.zeros((1, 3 * Cp), jnp.float32)
    B_qkv = (B_qkv.at[0, 0:C].set(bq_eff)
                  .at[0, Cp:Cp + C].set(bk_eff)
                  .at[0, 2 * Cp:2 * Cp + C].set(bv_eff))
    W_out = (jnp.zeros((Cp, Cp), jnp.float32)
                .at[:C, :C].set(params["w_out"].reshape(C, C).T)).astype(jnp.bfloat16)
    B_out = jnp.zeros((1, Cp), jnp.float32).at[0, :C].set(params["b_out"])

    # --- layout glue: NCHW -> (B, HWp, Cp) bf16 with zero-padded channels / tokens ---
    x_tok = jnp.transpose(x_nchw, (0, 2, 3, 1)).reshape(B, HW, C)
    x_pad = (jnp.zeros((B, HWp, Cp), jnp.bfloat16)
                .at[:, :HW, :C].set(x_tok.astype(jnp.bfloat16)))

    grid = (B, HWp // TQ)

    out_pad = pl.pallas_call(
        functools.partial(attention_block_kernel, n_valid=HW),
        out_shape=jax.ShapeDtypeStruct((B, HWp, Cp), jnp.bfloat16),
        grid_spec=pltpu.PrefetchScalarGridSpec(
            num_scalar_prefetch=0,
            grid=grid,
            in_specs=[
                # full (HWp, Cp) slab per batch element; block index constant across q tiles
                pl.BlockSpec((None, HWp, Cp), lambda b, q: (b, 0, 0)),
                pl.BlockSpec((Cp, 3 * Cp), lambda b, q: (0, 0)),
                pl.BlockSpec((1, 3 * Cp), lambda b, q: (0, 0)),
                pl.BlockSpec((Cp, Cp), lambda b, q: (0, 0)),
                pl.BlockSpec((1, Cp), lambda b, q: (0, 0)),
            ],
            out_specs=pl.BlockSpec((None, TQ, Cp), lambda b, q: (b, q, 0)),
            scratch_shapes=[
                pltpu.VMEM((HWp, Cp), jnp.bfloat16),   # K resident for the batch element
                pltpu.VMEM((HWp, Cp), jnp.bfloat16),   # V resident for the batch element
            ],
        ),
        compiler_params=pltpu.CompilerParams(
            # K/V scratch is initialized at qi==0 and carried across query tiles -> the q
            # axis MUST stay "arbitrary"; batch axis is "parallel" (megacore).
            dimension_semantics=("parallel", "arbitrary"),
            vmem_limit_bytes=_vmem_limit_bytes(),
        ),
    )(x_pad, W_qkv, B_qkv, W_out, B_out)

    # --- layout glue: (B, HWp, Cp) bf16 -> NCHW f32 (drop token / channel padding) ---
    out_tok = out_pad[:, :HW, :C].astype(jnp.float32)
    return jnp.transpose(out_tok.reshape(B, H, W, C), (0, 3, 1, 2))


def make_params(key, ch_in):
    """Deterministic synthetic parameters matching the PyTorch module's shapes."""
    k1, k2, k3, k4 = jax.random.split(key, 4)
    return {
        # nn.Conv2d(ch_in, ch_in*3, 1): weight (3C, C, 1, 1), bias (3C,)
        "w_qkv": 0.2 * jax.random.normal(k1, (3 * ch_in, ch_in, 1, 1), jnp.float32),
        "b_qkv": 0.1 * jax.random.normal(k2, (3 * ch_in,), jnp.float32),
        # nn.Conv2d(ch_in, ch_in, 1): weight (C, C, 1, 1), bias (C,)
        "w_out": 0.2 * jax.random.normal(k3, (ch_in, ch_in, 1, 1), jnp.float32),
        "b_out": 0.1 * jax.random.normal(k4, (ch_in,), jnp.float32),
        # nn.BatchNorm2d(ch_in): gamma, beta
        "bn_gamma": 1.0 + 0.1 * jnp.arange(ch_in, dtype=jnp.float32),
        "bn_beta": 0.05 * jnp.arange(ch_in, dtype=jnp.float32),
    }


def reference_forward(x_nchw, params):
    """Pure-JAX reference mirroring the PyTorch forward (training-mode BN), all f32."""
    B, C, H, W = x_nchw.shape
    eps = 1e-5
    mean = jnp.mean(x_nchw, axis=(0, 2, 3), keepdims=True)
    var = jnp.var(x_nchw, axis=(0, 2, 3), keepdims=True)
    xn = (x_nchw - mean) / jnp.sqrt(var + eps)
    xn = xn * params["bn_gamma"][None, :, None, None] + params["bn_beta"][None, :, None, None]

    wqkv = params["w_qkv"].reshape(3 * C, C)
    qkv = jnp.einsum("oc,bchw->bohw", wqkv, xn) + params["b_qkv"][None, :, None, None]
    q, k, v = qkv[:, :C], qkv[:, C:2 * C], qkv[:, 2 * C:]
    q = jnp.transpose(q, (0, 2, 3, 1)).reshape(B, H * W, C)
    k = k.reshape(B, C, H * W)
    v = jnp.transpose(v, (0, 2, 3, 1)).reshape(B, H * W, C)
    dot = jnp.einsum("bsc,bct->bst", q, k) * (C ** -0.5)
    attn = jax.nn.softmax(dot, axis=-1)
    out = jnp.einsum("bst,btc->bsc", attn, v).reshape(B, H, W, C)
    out = jnp.transpose(out, (0, 3, 1, 2))
    wo = params["w_out"].reshape(C, C)
    out = jnp.einsum("oc,bchw->bohw", wo, out) + params["b_out"][None, :, None, None]
    return out + x_nchw


if __name__ == "__main__":
    B, C, H, W = 2, 4, 16, 16
    key = jax.random.PRNGKey(0)
    kx, kp = jax.random.split(key)
    x = jax.random.normal(kx, (B, C, H, W), jnp.float32)
    params = make_params(kp, C)

    y = jax.block_until_ready(attention_block_forward(x, params))
    y_ref = jax.block_until_ready(reference_forward(x, params))

    assert y.shape == (B, C, H, W)
    # bf16 I/O + bf16 MXU inputs + bf16 exp + approx reciprocal -> loosened tolerance vs the
    # f32 reference.
    err = float(jnp.max(jnp.abs(y - y_ref)))
    assert jnp.allclose(y, y_ref, atol=3e-2, rtol=3e-2), f"mismatch vs reference (max|err|={err})"

    print("KERNEL_OK")
</pallas_src>

<mosaic_0001>
module attributes {stable_mosaic.version = 11 : i64} {
  func.func @attention_block_kernel(%arg0: i32, %arg1: i32, %arg2: memref<1x256x128xbf16, #tpu.memory_space<vmem>>, %arg3: memref<128x384xbf16, #tpu.memory_space<vmem>>, %arg4: memref<1x384xf32, #tpu.memory_space<vmem>>, %arg5: memref<128x128xbf16, #tpu.memory_space<vmem>>, %arg6: memref<1x128xf32, #tpu.memory_space<vmem>>, %arg7: memref<1x256x128xbf16, #tpu.memory_space<vmem>>, %arg8: memref<256x128xbf16, #tpu.memory_space<vmem>>, %arg9: memref<256x128xbf16, #tpu.memory_space<vmem>>) attributes {dimension_semantics = [#tpu.dimension_semantics<parallel>, #tpu.dimension_semantics<arbitrary>], iteration_bounds = array<i64: 2, 1>, scalar_prefetch = 0 : i64, scratch_operands = 2 : i64, tpu.core_type = #tpu.core_type<tc>, window_params = [{transform_indices = @transform_0, window_bounds = array<i64: 1, 256, 128>}, {pipeline_mode = #tpu.pipeline_mode<synchronous>, transform_indices = @transform_1, window_bounds = array<i64: 128, 384>}, {pipeline_mode = #tpu.pipeline_mode<synchronous>, transform_indices = @transform_2, window_bounds = array<i64: 1, 384>}, {pipeline_mode = #tpu.pipeline_mode<synchronous>, transform_indices = @transform_3, window_bounds = array<i64: 128, 128>}, {pipeline_mode = #tpu.pipeline_mode<synchronous>, transform_indices = @transform_4, window_bounds = array<i64: 1, 128>}, {transform_indices = @transform_5, window_bounds = array<i64: 1, 256, 128>}]} {
    %c0_i32 = arith.constant 0 : i32
    %0 = arith.cmpi eq, %arg1, %c0_i32 : i32
    %1 = arith.extui %0 : i1 to i32
    %c0_i32_0 = arith.constant 0 : i32
    %2 = arith.cmpi ne, %1, %c0_i32_0 : i32
    scf.if %2 {
      %c0_22 = arith.constant 0 : index
      %c0_23 = arith.constant 0 : index
      %c0_24 = arith.constant 0 : index
      %43 = vector.load %arg2[%c0_22, %c0_23, %c0_24] : memref<1x256x128xbf16, #tpu.memory_space<vmem>>, vector<1x256x128xbf16>
      %44 = vector.shape_cast %43 : vector<1x256x128xbf16> to vector<256x128xbf16>
      %c0_25 = arith.constant 0 : index
      %c128 = arith.constant 128 : index
      %45 = vector.load %arg3[%c0_25, %c128] : memref<128x384xbf16, #tpu.memory_space<vmem>>, vector<128x128xbf16>
      %cst_26 = arith.constant dense<0.000000e+00> : vector<256x128xf32>
      %46 = tpu.matmul %44, %45, %cst_26 {dimension_numbers = #tpu.dot_dimension_numbers<[1], [0], [0], [1], [0, 0, 1, 1], [], []>} : vector<256x128xbf16>, vector<128x128xbf16>, vector<256x128xf32> -> vector<256x128xf32>
      %c0_27 = arith.constant 0 : index
      %c128_28 = arith.constant 128 : index
      %47 = vector.load %arg4[%c0_27, %c128_28] : memref<1x384xf32, #tpu.memory_space<vmem>>, vector<1x128xf32>
      %48 = vector.broadcast %47 : vector<1x128xf32> to vector<256x128xf32>
      %49 = arith.addf %46, %48 : vector<256x128xf32>
      %50 = arith.truncf %49 : vector<256x128xf32> to vector<256x128xbf16>
      %c0_29 = arith.constant 0 : index
      %c0_30 = arith.constant 0 : index
      %51 = vector.load %arg8[%c0_29, %c0_30] : memref<256x128xbf16, #tpu.memory_space<vmem>>, vector<256x128xbf16>
      tpu.vector_store %arg8[%c0_29, %c0_30], %50 {strides = array<i32>} : memref<256x128xbf16, #tpu.memory_space<vmem>>, vector<256x128xbf16>,
      %c0_31 = arith.constant 0 : index
      %c256 = arith.constant 256 : index
      %52 = vector.load %arg3[%c0_31, %c256] : memref<128x384xbf16, #tpu.memory_space<vmem>>, vector<128x128xbf16>
      %cst_32 = arith.constant dense<0.000000e+00> : vector<256x128xf32>
      %53 = tpu.matmul %44, %52, %cst_32 {dimension_numbers = #tpu.dot_dimension_numbers<[1], [0], [0], [1], [0, 0, 1, 1], [], []>} : vector<256x128xbf16>, vector<128x128xbf16>, vector<256x128xf32> -> vector<256x128xf32>
      %c0_33 = arith.constant 0 : index
      %c256_34 = arith.constant 256 : index
      %54 = vector.load %arg4[%c0_33, %c256_34] : memref<1x384xf32, #tpu.memory_space<vmem>>, vector<1x128xf32>
      %55 = vector.broadcast %54 : vector<1x128xf32> to vector<256x128xf32>
      %56 = arith.addf %53, %55 : vector<256x128xf32>
      %57 = arith.truncf %56 : vector<256x128xf32> to vector<256x128xbf16>
      %c0_35 = arith.constant 0 : index
      %c0_36 = arith.constant 0 : index
      %58 = vector.load %arg9[%c0_35, %c0_36] : memref<256x128xbf16, #tpu.memory_space<vmem>>, vector<256x128xbf16>
      tpu.vector_store %arg9[%c0_35, %c0_36], %57 {strides = array<i32>} : memref<256x128xbf16, #tpu.memory_space<vmem>>, vector<256x128xbf16>,
    } else {
    }
    %c256_i32 = arith.constant 256 : i32
    %3 = arith.muli %arg1, %c256_i32 : i32
    %4 = tpu.assume_multiple %3, 256 : i32
    %c0 = arith.constant 0 : index
    %5 = arith.index_cast %4 : i32 to index
    %c0_1 = arith.constant 0 : index
    %6 = vector.load %arg2[%c0, %5, %c0_1] : memref<1x256x128xbf16, #tpu.memory_space<vmem>>, vector<1x256x128xbf16>
    %7 = vector.shape_cast %6 : vector<1x256x128xbf16> to vector<256x128xbf16>
    %c0_2 = arith.constant 0 : index
    %c0_3 = arith.constant 0 : index
    %8 = vector.load %arg3[%c0_2, %c0_3] : memref<128x384xbf16, #tpu.memory_space<vmem>>, vector<128x128xbf16>
    %cst = arith.constant dense<0.000000e+00> : vector<256x128xf32>
    %9 = tpu.matmul %7, %8, %cst {dimension_numbers = #tpu.dot_dimension_numbers<[1], [0], [0], [1], [0, 0, 1, 1], [], []>} : vector<256x128xbf16>, vector<128x128xbf16>, vector<256x128xf32> -> vector<256x128xf32>
    %c0_4 = arith.constant 0 : index
    %c0_5 = arith.constant 0 : index
    %10 = vector.load %arg4[%c0_4, %c0_5] : memref<1x384xf32, #tpu.memory_space<vmem>>, vector<1x128xf32>
    %11 = vector.broadcast %10 : vector<1x128xf32> to vector<256x128xf32>
    %12 = arith.addf %9, %11 : vector<256x128xf32>
    %13 = arith.truncf %12 : vector<256x128xf32> to vector<256x128xbf16>
    %c0_6 = arith.constant 0 : index
    %c0_7 = arith.constant 0 : index
    %14 = vector.load %arg8[%c0_6, %c0_7] : memref<256x128xbf16, #tpu.memory_space<vmem>>, vector<256x128xbf16>
    %cst_8 = arith.constant dense<0.000000e+00> : vector<256x256xf32>
    %15 = tpu.matmul %13, %14, %cst_8 {dimension_numbers = #tpu.dot_dimension_numbers<[1], [1], [0], [0], [0, 0, 1, 0], [], []>} : vector<256x128xbf16>, vector<256x128xbf16>, vector<256x256xf32> -> vector<256x256xf32>
    %cst_9 = arith.constant dense<0xFF800000> : vector<256xf32>
    %16 = vector.multi_reduction <maximumf>, %15, %cst_9 [1] : vector<256x256xf32> to vector<256xf32>
    %17 = vector.shape_cast %16 : vector<256xf32> to vector<256x1xf32>
    %18 = vector.broadcast %17 : vector<256x1xf32> to vector<256x256xf32>
    %19 = arith.subf %15, %18 : vector<256x256xf32>
    %20 = arith.truncf %19 : vector<256x256xf32> to vector<256x256xbf16>
    %21 = math.exp %20 : vector<256x256xbf16>
    %22 = arith.extf %21 : vector<256x256xbf16> to vector<256x256xf32>
    %cst_10 = arith.constant dense<0.000000e+00> : vector<256xf32>
    %23 = vector.multi_reduction <add>, %22, %cst_10 [1] : vector<256x256xf32> to vector<256xf32>
    %24 = vector.shape_cast %23 : vector<256xf32> to vector<256x1xf32>
    %25 = tpu.reciprocal %24 {approx = true} : vector<256x1xf32> -> vector<256x1xf32>
    %26 = arith.truncf %25 : vector<256x1xf32> to vector<256x1xbf16>
    %27 = vector.broadcast %26 : vector<256x1xbf16> to vector<256x256xbf16>
    %28 = arith.mulf %21, %27 : vector<256x256xbf16>
    %c0_11 = arith.constant 0 : index
    %c0_12 = arith.constant 0 : index
    %29 = vector.load %arg9[%c0_11, %c0_12] : memref<256x128xbf16, #tpu.memory_space<vmem>>, vector<256x128xbf16>
    %cst_13 = arith.constant dense<0.000000e+00> : vector<256x128xf32>
    %30 = tpu.matmul %28, %29, %cst_13 {dimension_numbers = #tpu.dot_dimension_numbers<[1], [0], [0], [1], [0, 0, 1, 1], [], []>} : vector<256x256xbf16>, vector<256x128xbf16>, vector<256x128xf32> -> vector<256x128xf32>
    %31 = arith.truncf %30 : vector<256x128xf32> to vector<256x128xbf16>
    %c0_14 = arith.constant 0 : index
    %c0_15 = arith.constant 0 : index
    %32 = vector.load %arg5[%c0_14, %c0_15] : memref<128x128xbf16, #tpu.memory_space<vmem>>, vector<128x128xbf16>
    %cst_16 = arith.constant dense<0.000000e+00> : vector<256x128xf32>
    %33 = tpu.matmul %31, %32, %cst_16 {dimension_numbers = #tpu.dot_dimension_numbers<[1], [0], [0], [1], [0, 0, 1, 1], [], []>} : vector<256x128xbf16>, vector<128x128xbf16>, vector<256x128xf32> -> vector<256x128xf32>
    %c0_17 = arith.constant 0 : index
    %c0_18 = arith.constant 0 : index
    %34 = vector.load %arg6[%c0_17, %c0_18] : memref<1x128xf32, #tpu.memory_space<vmem>>, vector<1x128xf32>
    %35 = vector.broadcast %34 : vector<1x128xf32> to vector<256x128xf32>
    %36 = arith.addf %33, %35 : vector<256x128xf32>
    %37 = arith.extf %7 : vector<256x128xbf16> to vector<256x128xf32>
    %38 = arith.addf %36, %37 : vector<256x128xf32>
    %39 = arith.truncf %38 : vector<256x128xf32> to vector<256x128xbf16>
    %c0_19 = arith.constant 0 : index
    %c0_20 = arith.constant 0 : index
    %c0_21 = arith.constant 0 : index
    %40 = vector.load %arg7[%c0_19, %c0_20, %c0_21] : memref<1x256x128xbf16, #tpu.memory_space<vmem>>, vector<1x256x128xbf16>
    %41 = vector.shape_cast %40 : vector<1x256x128xbf16> to vector<256x128xbf16>
    %42 = vector.shape_cast %39 : vector<256x128xbf16> to vector<1x256x128xbf16>
    tpu.vector_store %arg7[%c0_19, %c0_20, %c0_21], %42 {strides = array<i32>} : memref<1x256x128xbf16, #tpu.memory_space<vmem>>, vector<1x256x128xbf16>,
    return
  }
  func.func @transform_0(%arg0: i32, %arg1: i32) -> (i32, i32, i32) {
    %c0_i32 = arith.constant 0 : i32
    %c0_i32_0 = arith.constant 0 : i32
    %c0_i32_1 = arith.constant 0 : i32
    return %arg0, %c0_i32, %c0_i32_0 : i32, i32, i32
  }
  func.func @transform_1(%arg0: i32, %arg1: i32) -> (i32, i32) {
    %c0_i32 = arith.constant 0 : i32
    %c0_i32_0 = arith.constant 0 : i32
    %c0_i32_1 = arith.constant 0 : i32
    return %c0_i32, %c0_i32_0 : i32, i32
  }
  func.func @transform_2(%arg0: i32, %arg1: i32) -> (i32, i32) {
    %c0_i32 = arith.constant 0 : i32
    %c0_i32_0 = arith.constant 0 : i32
    %c0_i32_1 = arith.constant 0 : i32
    return %c0_i32, %c0_i32_0 : i32, i32
  }
  func.func @transform_3(%arg0: i32, %arg1: i32) -> (i32, i32) {
    %c0_i32 = arith.constant 0 : i32
    %c0_i32_0 = arith.constant 0 : i32
    %c0_i32_1 = arith.constant 0 : i32
    return %c0_i32, %c0_i32_0 : i32, i32
  }
  func.func @transform_4(%arg0: i32, %arg1: i32) -> (i32, i32) {
    %c0_i32 = arith.constant 0 : i32
    %c0_i32_0 = arith.constant 0 : i32
    %c0_i32_1 = arith.constant 0 : i32
    return %c0_i32, %c0_i32_0 : i32, i32
  }
  func.func @transform_5(%arg0: i32, %arg1: i32) -> (i32, i32, i32) {
    %c0_i32 = arith.constant 0 : i32
    %c0_i32_0 = arith.constant 0 : i32
    return %arg0, %arg1, %c0_i32 : i32, i32, i32
  }
}

</mosaic_0001>

<bundles_post_ra>
// kernel: tpu_custom_call.1
= control target key start
LH: loop header
LB: loop body
LE: loop exit
PB: predicated region body
PF: predicated region fallthrough
CT: control target
= control target key end

     0   :  { %10 = vsyncpa [#allocation5], 0  ;;  %s5163_s0 = inlined_call_operand.hbm [shape: bf16[2,256,128], index: 0, kind: input, shape index: {}]   ;;  %s5164_s1 = inlined_call_operand.hbm [shape: bf16[128,384], index: 1, kind: input, shape index: {}]   ;;  %s5165_s2 = inlined_call_operand.vmem [shape: f32[1,384], index: 2, kind: input, shape index: {}]   ;;  %s5166_s3 = inlined_call_operand.hbm [shape: bf16[128,128], index: 3, kind: input, shape index: {}]   ;;  %s5167_s4 = inlined_call_operand.vmem [shape: f32[1,128], index: 4, kind: input, shape index: {}]   ;;  %s5168_s5 = inlined_call_operand.hbm [shape: bf16[2,256,128], index: 5, kind: output, shape index: {}]  }
   0x1   :  { %12 = vsyncpa [#allocation5 + $0x1], 0 }
   0x2   :  { %13 = vsyncpa [#allocation8], 0 }
   0x3   :  { %14 = vsyncpa [#allocation6], 0 }
   0x4   :  { %16 = vsyncpa [#allocation6 + $0x1], 0  ;;  %s4059_s18 = smov 0   ;;  %s4061_s19 = smov 0  }
   0x5   :  { %s4063_s20 = smov 0   ;;  %s4065_s21 = smov 0  }
   0x6   :  { %s4067_s22 = smov 0   ;;  %s4069_s23 = smov 0  }
   0x7 LB: > { %s2836_s24 = sadd.s32 4294967295, %s4017_s23   ;;  %s2837_s25 = sadd.s32 4294967294, %s4017_s23   ;;  %s4017_s23 = sphi %s4069_s23, %s22_s23   ;;  %s4013_s22 = sphi %s4067_s22, %s5245_s22   ;;  %s4009_s21 = sphi %s4065_s21, %s5244_s21   ;;  %s4005_s20 = sphi %s4063_s20, %s5243_s20   ;;  %s4001_s19 = sphi %s4061_s19, %s5242_s19   ;;  %s3997_s18 = sphi %s4059_s18, %s5241_s18  }
   0x8   : > { %p54_p0 = scmp.ne.s32.totalorder %s4001_s19, %s3997_s18  ;;  %p4093_p1 = scmp.eq.s32.totalorder %s2836_s24, 0 }
   0x9   : > { %p4097_p2 = scmp.eq.s32.totalorder %s2836_s24, 1  ;;  %p170_p3 = scmp.eq.s32.totalorder %s2837_s25, 1 }
   0xa   : > { %s5189_s26 = scalar_select %p4093_p1, 1, 0 }
   0xb   : > { %p4103_p4 = por %p4093_p1, %p54_p0  ;;  %p2838_p5 = scmp.ge.s32.totalorder %s4017_s23, 1 }
   0xc   : > { %p4108_p6 = por %p170_p3, %p54_p0  ;;  %p177_p7 = scmp.lt.s32.totalorder %s4017_s23, 3 }
   0xd   : > { %s5191_s28 = scalar_select %p4103_p4, 1, 0 }
   0xe   : > { %s5192_s29 = scalar_select %p4108_p6, 1, 0 }
   0xf   : > { %p4113_p8 = pnand %p2838_p5, %p177_p7  ;;  %s4019_s6 = smov [#allocation7]  }
  0x10   : > { %s189_s7 = sshll.u32 %s4019_s6, 4  ;;  %s4020_s9 = smov [#allocation9]   ;;  %s4117_s7 = int_to_ptr.vmem [resolvable:$true] %s189_s7 }
  0x11   : > { %p3544_p9 = pneg %p4113_p8  ;;  %s205_s10 = sshll.u32 %s4020_s9, 4  ;;  %s4128_s10 = int_to_ptr.vmem [resolvable:$true] %s205_s10 }
  0x12   : > { %s3845_s13 = scalar_lea.hbm %s5164_s1, 3072 }
  0x13   : > { %p4124_p11 = pnand %p3544_p9, %p4093_p1  ;;  %p3846_p12 = scmp.ne.s32.totalorder %s5164_s1, %s3845_s13 }
  0x14   : > { %p3852_p5 = scmp.lt.u32.totalorder %s3845_s13, %s5164_s1 }
  0x15   : > { %p3847_p13 = pneg %p4124_p11 }
  0x17   : > { %p3848_p0 = pnand %p3847_p13, %p3846_p12 }
  0x19   : > { %p3849_p3 = pneg %p3848_p0 }
  0x1b   : > { %p3854_p7 = pnand %p3852_p5, %p3849_p3 }
  0x1d   : > { %3857 = shalt.err (!%p3854_p7)
}
  0x1e   : > { %s3858_s24 = scalar_lea.vmem %s4117_s7, 3072  ;;  %p3866_p1 = scmp.lt.s32.totalorder %s4117_s7, %s4117_s7 }
  0x1f   : > { %p3859_p9 = scmp.ne.s32.totalorder %s4117_s7, %s3858_s24  ;;  %p3867_p12 = scmp.lt.s32.totalorder %s3858_s24, %s3858_s24 }
  0x21   : > { %p3861_p10 = pnand %p3859_p9, %p3847_p13  ;;  %p3868_p0 = por %p3867_p12, %p3866_p1 }
  0x23   : > { %p3862_p6 = pneg %p3861_p10 }
  0x25   : > { %p3869_p4 = pnand %p3868_p0, %p3862_p6 }
  0x27   : > { %3872 = shalt.err (!%p3869_p4)
}
  0x28   : > { %s4021_s25 = smov 192   ;;  %s4022_s6 = smov 12  }
  0x29   : > { %3547 = dma.hbm_to_vmem [thread:$0]  (!%p4124_p11), %s5164_s1, 3072, %s4117_s7, [#allocation8], %s4021_s25, %s4021_s25, %s4022_s6  }
  0x2a   : > { %s3873_s14 = scalar_lea.hbm %s5166_s3, 1024 }
  0x2b   : > { %p3874_p1 = scmp.ne.s32.totalorder %s5166_s3, %s3873_s14  ;;  %p3880_p10 = scmp.lt.u32.totalorder %s3873_s14, %s5166_s3 }
  0x2d   : > { %p3876_p4 = pnand %p3874_p1, %p3847_p13 }
  0x2f   : > { %p3877_p6 = pneg %p3876_p4 }
  0x31   : > { %p3882_p3 = pnand %p3880_p10, %p3877_p6 }
  0x33   : > { %3885 = shalt.err (!%p3882_p3)
}
  0x34   : > { %s3886_s7 = scalar_lea.vmem %s4128_s10, 1024  ;;  %p3894_p12 = scmp.lt.s32.totalorder %s4128_s10, %s4128_s10 }
  0x35   : > { %p3887_p5 = scmp.ne.s32.totalorder %s4128_s10, %s3886_s7  ;;  %p3895_p0 = scmp.lt.s32.totalorder %s3886_s7, %s3886_s7 }
  0x37   : > { %p3889_p7 = pnand %p3887_p5, %p3847_p13  ;;  %p3896_p1 = por %p3895_p0, %p3894_p12 }
  0x39   : > { %p3890_p9 = pneg %p3889_p7 }
  0x3b   : > { %p3897_p4 = pnand %p3896_p1, %p3890_p9 }
  0x3d   : > { %3900 = shalt.err (!%p3897_p4)
}
  0x3e   : > { %s5172_s25 = smov 64   ;;  %s4024_s6 = smov 4  }
  0x3f   : > { %3550 = dma.hbm_to_vmem [thread:$0]  (!%p4124_p11), %s5166_s3, 1024, %s4128_s10, [#allocation8], %s5172_s25, %s5172_s25, %s4024_s6  }
  0x40   : > { %s34_s12 = sadd.s32 1, %s4013_s22  ;;  %s41_s13 = sadd.s32 1, %s4005_s20 }
  0x41   : > { %p36_p13 = scmp.ge.s32.totalorder %s34_s12, 2  ;;  %p48_p6 = scmp.ne.s32.totalorder %s4005_s20, %s4001_s19 }
  0x42   : > { %p49_p10 = scmp.eq.s32.totalorder %s4017_s23, 0  ;;  %p3561_p3 = scmp.lt.s32.totalorder %s4017_s23, 2 }
  0x43   : > { %s5247_s12 = smov (%p36_p13, %s34_s12), 0  ;;  %p4195_p7 = por %p4097_p2, %p48_p6 }
  0x44   : > { %p50_p5 = por %p49_p10, %p48_p6  ;;  %s38_s14 = ssub.s32 %s4013_s22, %s5247_s12 }
  0x45   : > { %s5195_s8 = scalar_select %p4195_p7, 1, 0 }
  0x46   : > { %s222_s15 = sand.u32 1, %s4005_s20   ;;  %p39_p9 = scmp.eq.s32.totalorder %s38_s14, 0 }
  0x47   : > { %s2842_s10 = sshll.u32 %s222_s15, 7  ;;  %s2955_s16 = sshll.u32 %s4013_s22, 11 }
  0x48   : > { %s4204_s17 = scalar_select %p39_p9, %s4005_s20, %s41_s13  }
  0x49   : > { %s4209_s9 = scalar_lea.hbm %s5163_s0, %s2955_s16  ;;  %s226_s27 = scalar_lea.vmem [#allocation4], %s2842_s10 }
  0x4a   : > { %s233_s11 = sshll.u32 %s226_s27, 4  ;;  %p4213_p2 = pnand %p3561_p3, %p50_p5  ;;  %s4217_s11 = int_to_ptr.vmem [resolvable:$true] %s233_s11 }
  0x4b   : > { %s4219_s13 = scalar_lea.sflag [#allocation5], %s222_s15  ;;  %s3901_s14 = scalar_lea.hbm %s4209_s9, 2048 }
  0x4c   : > { %p3902_p11 = scmp.ne.s32.totalorder %s4209_s9, %s3901_s14  ;;  %p3903_p12 = pneg %p4213_p2 }
  0x4d   : > { %s3906_s24 = scalar_lea.hbm %s5163_s0, 4096  ;;  %p3907_p4 = scmp.lt.u32.totalorder %s4209_s9, %s5163_s0 }
  0x4e   : > { %p3904_p0 = pnand %p3903_p12, %p3902_p11  ;;  %p3908_p13 = scmp.lt.u32.totalorder %s3906_s24, %s3901_s14 }
  0x4f   : > { %p3910_p10 = scmp.lt.u32.totalorder %s3901_s14, %s4209_s9 }
  0x50   : > { %p3905_p1 = pneg %p3904_p0  ;;  %p3909_p6 = por %p3908_p13, %p3907_p4 }
  0x52   : > { %p3911_p3 = por %p3910_p10, %p3909_p6 }
  0x54   : > { %p3912_p5 = pnand %p3911_p3, %p3905_p1 }
  0x56   : > { %3915 = shalt.err (!%p3912_p5)
}
  0x57   : > { %s3916_s15 = scalar_lea.vmem %s4217_s11, 2048  ;;  %s4025_s10 = smov [#allocation4]  }
  0x58   : > { %p3917_p9 = scmp.ne.s32.totalorder %s4217_s11, %s3916_s15  ;;  %s3921_s16 = sshll.u32 %s4025_s10, 4  ;;  %s3922_s16 = int_to_ptr.vmem [resolvable:$false] %s3921_s16 }
  0x59   : > { %s3923_s7 = scalar_lea.vmem %s3922_s16, 4096  ;;  %p3924_p7 = scmp.lt.s32.totalorder %s4217_s11, %s3922_s16 }
  0x5a   : > { %p3919_p11 = pnand %p3917_p9, %p3903_p12  ;;  %p3925_p4 = scmp.lt.s32.totalorder %s3923_s7, %s3916_s15 }
  0x5c   : > { %p3920_p0 = pneg %p3919_p11  ;;  %p3926_p13 = por %p3925_p4, %p3924_p7 }
  0x5e   : > { %p3927_p6 = pnand %p3926_p13, %p3920_p0 }
  0x60   : > { %3930 = shalt.err (!%p3927_p6)
}
  0x61   : > { %s5197_s14 = smov 64   ;;  %245 = sbr.rel (%p4113_p8) target bundleno = 1651 (0x673), region = 40 }
  0x62   : > { %3554 = dma.hbm_to_vmem [thread:$0]  (!%p4213_p2), %s4209_s9, 2048, %s4217_s11, %s4219_s13, %s5197_s14, %s5197_s14, %s4024_s6  }
  0x68   : > { %s4253_s24 = sand.u32 1, %s4001_s19   ;;  %p5198_p7 = scmp.ne.s32.totalorder %s5191_s28, 0 }
  0x69   : > { %s2846_s27 = sshll.u32 %s4253_s24, 7  ;;  %s248_s15 = scalar_lea.sflag [#allocation5], %s4253_s24 }
  0x6a   : > { %s4259_s25 = scalar_lea.vmem [#allocation4], %s2846_s27 }
  0x6b   : > { %3984 = dma.done.wait (%p5198_p7), %s248_s15, 2048  }
  0x6c   : > { %3986 = vsyncadd (%p5198_p7), %s248_s15, 4294965248  ;;  %p5199_p2 = scmp.ne.s32.totalorder %s5189_s26, 0 }
  0x6e   : > { %3988 = dma.done.wait (%p5199_p2), [#allocation8], 4096  }
  0x6f   : > { %3990 = vsyncadd (%p5199_p2), [#allocation8], 4294963200  ;;  %v3621_v0 = vld [vmem:[#allocation7 + $0x4] ss:$12 sps:$4 sm:$0xff]   ;;  %v3622_v1 = vld [vmem:[#allocation7 + $0x1c] ss:$12 sps:$4 sm:$0xff]  }
  0x70   : > { %3340 = vmatprep.subr.bf16.mxu0 %v3621_v0  ;;  %v3623_v2 = vld [vmem:[#allocation7 + $0x34] ss:$12 sps:$4 sm:$0xff]   ;;  %v3624_v3 = vld [vmem:[#allocation7 + $0x4c] ss:$12 sps:$4 sm:$0xff]   ;;  %v3625_v5 = vld [vmem:[#allocation7 + $0x64] ss:$12 sps:$4 sm:$0xff]  }
  0x71   : > { %3341 = vmatpush3.bf16.msra.mxu0 %v3621_v0  ;;  %v3629_v4 = vld [vmem:[%s4259_s25] sm:$0xff]   ;;  %v3626_v6 = vld [vmem:[#allocation7 + $0x7c] ss:$12 sps:$4 sm:$0xff]   ;;  %v3628_v8 = vld [vmem:[#allocation7 + $0xac] ss:$12 sps:$4 sm:$0xff]   ;;  %s5047_s16 = scalar_lea.vmem [#allocation10], %s2846_s27 }
  0x72   : > { %3342 = vmatprep.subr.bf16.mxu0 %v3622_v1  ;;  %3356 = vmatprep.mubr.bf16.mxu0 %v3629_v4  ;;  %v3627_v7 = vld [vmem:[#allocation7 + $0x94] ss:$12 sps:$4 sm:$0xff]   ;;  %v4271_v10 = vld [vmem:[%s4259_s25 + $0x8] sm:$0xff]   ;;  %v3640_v12 = vld [vmem:[#allocation7 + $0x18] ss:$12 sps:$4 sm:$0xff]   ;;  %s2988_s7 = sshll.u32 %s4009_s21, 11 }
  0x73   : > { %3404 = vmatprep.mubr.bf16.mxu1 %v3629_v4  ;;  %v3638_v9 = vld [vmem:[#allocation7] ss:$12 sps:$4 sm:$0xff]   ;;  %v4274_v11 = vld [vmem:[%s4259_s25 + $0x10] sm:$0xff]   ;;  %v4279_v16 = vld [vmem:[%s4259_s25 + $0x18] sm:$0xff]   ;;  %s2731_s14 = sshll.u32 %s5047_s16, 4  ;;  %s2716_s21 = scalar_lea.sflag [#allocation6], %s4253_s24  ;;  %s5112_s14 = int_to_ptr.vmem [resolvable:$true] %s2731_s14 }
  0x74   : > { %v3643_v13 = vld [vmem:[#allocation7 + $0x30] ss:$12 sps:$4 sm:$0xff]   ;;  %v3665_v14 = vld [vmem:[#allocation7 + $0x8] ss:$12 sps:$4 sm:$0xff]   ;;  %v3666_v15 = vld [vmem:[#allocation7 + $0x20] ss:$12 sps:$4 sm:$0xff]  }
  0x75   : > { %3343 = vmatpush3.bf16.msra.mxu0 %v3622_v1  ;;  %3388 = vmatprep.subr.bf16.mxu1 %v3665_v14  ;;  %v3633_v17 = vld [vmem:[%s4259_s25 + $0x20] sm:$0xff]   ;;  %v3644_v18 = vld [vmem:[#allocation7 + $0x48] ss:$12 sps:$4 sm:$0xff]   ;;  %v3668_v21 = vld [vmem:[#allocation7 + $0x50] ss:$12 sps:$4 sm:$0xff]   ;;  %s3931_s26 = scalar_lea.vmem %s5112_s14, 2048 }
  0x76   : > { %3344 = vmatprep.subr.bf16.mxu0 %v3623_v2  ;;  %3389 = vmatpush3.bf16.msra.mxu1 %v3665_v14  ;;  %v3667_v19 = vld [vmem:[#allocation7 + $0x38] ss:$12 sps:$4 sm:$0xff]   ;;  %v3647_v20 = vld [vmem:[#allocation7 + $0x60] ss:$12 sps:$4 sm:$0xff]   ;;  %v3635_v23 = vld [vmem:[%s4259_s25 + $0x30] sm:$0xff]   ;;  %p3932_p8 = scmp.ne.s32.totalorder %s5112_s14, %s3931_s26  ;;  %p5238_p12 = scmp.ne.s32.totalorder %s5195_s8, 0 }
  0x77   : > { %3390 = vmatprep.subr.bf16.mxu1 %v3666_v15  ;;  %v3634_v22 = vld [vmem:[%s4259_s25 + $0x28] sm:$0xff]   ;;  %v3648_v24 = vld [vmem:[#allocation7 + $0x78] ss:$12 sps:$4 sm:$0xff]   ;;  %v3651_v26 = vld [vmem:[#allocation7 + $0x90] ss:$12 sps:$4 sm:$0xff]   ;;  %s4026_s28 = smov [#allocation10]  }
  0x78   : > { %v3669_v25 = vld [vmem:[#allocation7 + $0x68] ss:$12 sps:$4 sm:$0xff]   ;;  %v3670_v27 = vld [vmem:[#allocation7 + $0x80] ss:$12 sps:$4 sm:$0xff]   ;;  %v3636_v28 = vld [vmem:[%s4259_s25 + $0x38] sm:$0xff]   ;;  %p3933_p1 = pnand %p3932_p8, %p5238_p12  ;;  %s3935_s30 = sshll.u32 %s4026_s28, 4  ;;  %s3936_s30 = int_to_ptr.vmem [resolvable:$false] %s3935_s30 }
  0x79   : > { %3345 = vmatpush3.bf16.msra.mxu0 %v3623_v2  ;;  %v3637_v29 = vld [vmem:[%s4259_s25 + $0x40] sm:$0xff]   ;;  %v3652_v30 = vld [vmem:[#allocation7 + $0xa8] ss:$12 sps:$4 sm:$0xff]   ;;  %v3672_v32 = vld [vmem:[#allocation7 + $0xb0] ss:$12 sps:$4 sm:$0xff]   ;;  %s3937_s6 = scalar_lea.vmem %s3936_s30, 4096  ;;  %p3938_p3 = scmp.lt.s32.totalorder %s5112_s14, %s3936_s30 }
  0x7a   : > { %3346 = vmatprep.subr.bf16.mxu0 %v3624_v3  ;;  %3391 = vmatpush3.bf16.msra.mxu1 %v3666_v15  ;;  %v3671_v31 = vld [vmem:[#allocation7 + $0x98] ss:$12 sps:$4 sm:$0xff]   ;;  %v3639_v33 = vld [vmem:[%s4259_s25 + $0x48] sm:$0xff]   ;;  %v3641_v34 = vld [vmem:[%s4259_s25 + $0x50] sm:$0xff]   ;;  %p3934_p10 = pneg %p3933_p1  ;;  %p3939_p5 = scmp.lt.s32.totalorder %s3937_s6, %s3931_s26 }
  0x7b   : > { %3392 = vmatprep.subr.bf16.mxu1 %v3667_v19  ;;  %v3642_v35 = vld [vmem:[%s4259_s25 + $0x58] sm:$0xff]   ;;  %v3645_v36 = vld [vmem:[%s4259_s25 + $0x60] sm:$0xff]   ;;  %v3646_v37 = vld [vmem:[%s4259_s25 + $0x68] sm:$0xff]  }
  0x7c   : > { %v3649_v38 = vld [vmem:[%s4259_s25 + $0x70] sm:$0xff]   ;;  %v953_v39 = vld [vmem:[%s4259_s25] sm:$0xff]   ;;  %v3650_v40 = vld [vmem:[%s4259_s25 + $0x78] sm:$0xff]   ;;  %p3940_p9 = por %p3939_p5, %p3938_p3 }
  0x7d   : > { %3347 = vmatpush3.bf16.msra.mxu0 %v3624_v3  ;;  %v955_v41 = vld [vmem:[%s4259_s25 + $0x8] sm:$0xff]   ;;  %v957_v42 = vld [vmem:[%s4259_s25 + $0x10] sm:$0xff]   ;;  %v959_v43 = vld [vmem:[%s4259_s25 + $0x18] sm:$0xff]  }
  0x7e   : > { %3348 = vmatprep.subr.bf16.mxu0 %v3625_v5  ;;  %3393 = vmatpush3.bf16.msra.mxu1 %v3667_v19  ;;  %v961_v44 = vld [vmem:[%s4259_s25 + $0x20] sm:$0xff]   ;;  %v963_v45 = vld [vmem:[%s4259_s25 + $0x28] sm:$0xff]   ;;  %v965_v46 = vld [vmem:[%s4259_s25 + $0x30] sm:$0xff]   ;;  %p3941_p11 = pnand %p3940_p9, %p3934_p10 }
  0x7f   : > { %3394 = vmatprep.subr.bf16.mxu1 %v3668_v21  ;;  %v967_v47 = vld [vmem:[%s4259_s25 + $0x38] sm:$0xff]   ;;  %v969_v48 = vld [vmem:[%s4259_s25 + $0x40] sm:$0xff]   ;;  %v971_v49 = vld [vmem:[%s4259_s25 + $0x48] sm:$0xff]  }
  0x80   : > { %v973_v50 = vld [vmem:[%s4259_s25 + $0x50] sm:$0xff]   ;;  %v975_v51 = vld [vmem:[%s4259_s25 + $0x58] sm:$0xff]   ;;  %v977_v52 = vld [vmem:[%s4259_s25 + $0x60] sm:$0xff]  }
  0x81   : > { %3349 = vmatpush3.bf16.msra.mxu0 %v3625_v5  ;;  %v979_v53 = vld [vmem:[%s4259_s25 + $0x68] sm:$0xff]   ;;  %v981_v54 = vld [vmem:[%s4259_s25 + $0x70] sm:$0xff]   ;;  %v983_v55 = vld [vmem:[%s4259_s25 + $0x78] sm:$0xff]  }
  0x82   : > { %3350 = vmatprep.subr.bf16.mxu0 %v3626_v6  ;;  %3395 = vmatpush3.bf16.msra.mxu1 %v3668_v21  ;;  %v4316_v57 = vld [vmem:[%s5165_s2 + $0x1] ss:$0 sm:$0xff] }
  0x83   : > { %3396 = vmatprep.subr.bf16.mxu1 %v3669_v25 }
  0x85   : > { %3351 = vmatpush3.bf16.msra.mxu0 %v3626_v6 }
  0x86   : > { %3352 = vmatprep.subr.bf16.mxu0 %v3627_v7  ;;  %3397 = vmatpush3.bf16.msra.mxu1 %v3669_v25 }
  0x87   : > { %3398 = vmatprep.subr.bf16.mxu1 %v3670_v27 }
  0x89   : > { %3353 = vmatpush3.bf16.msra.mxu0 %v3627_v7 }
  0x8a   : > { %3354 = vmatprep.subr.bf16.mxu0 %v3628_v8  ;;  %3399 = vmatpush3.bf16.msra.mxu1 %v3670_v27 }
  0x8b   : > { %3400 = vmatprep.subr.bf16.mxu1 %v3671_v31 }
  0x8d   : > { %3355 = vmatpush3.bf16.msra.mxu0 %v3628_v8 }
  0x8e   : > { %3436 = vmatprep.subr.bf16.mxu0 %v3638_v9  ;;  %3401 = vmatpush3.bf16.msra.mxu1 %v3671_v31 }
  0x8f   : > { %3402 = vmatprep.subr.bf16.mxu1 %v3672_v32 }
  0x90   : > { %3357 = vmatmul.mubr.bf16.vlgmr.msra.gmra.mrb[0].mxu0 %v4271_v10 }
  0x91   : > { %3360 = vmatprep.mubr.bf16.mxu0 %v4274_v11  ;;  %3437 = vmatpush3.bf16.msra.mxu0 %v3638_v9 }
  0x92   : > { %3438 = vmatprep.subr.bf16.mxu0 %v3640_v12  ;;  %3403 = vmatpush3.bf16.msra.mxu1 %v3672_v32 }
  0x95   : > { %3439 = vmatpush3.bf16.msra.mxu0 %v3640_v12  ;;  %3405 = vmatmul.mubr.bf16.vlgmr.msra.gmra.mrb[0].mxu1 %v4271_v10 }
  0x96   : > { %3440 = vmatprep.subr.bf16.mxu0 %v3643_v13  ;;  %3408 = vmatprep.mubr.bf16.mxu1 %v4274_v11 }
  0x98   : > { %3361 = vmatmul.mubr.bf16.gmra.mrb[4].mxu0 %v4279_v16 }
  0x99   : > { %3364 = vmatprep.mubr.bf16.mxu0 %v3633_v17  ;;  %3441 = vmatpush3.bf16.msra.mxu0 %v3643_v13 }
  0x9a   : > { %3442 = vmatprep.subr.bf16.mxu0 %v3644_v18 }
  0x9d   : > { %3443 = vmatpush3.bf16.msra.mxu0 %v3644_v18  ;;  %3409 = vmatmul.mubr.bf16.gmra.mrb[4].mxu1 %v4279_v16 }
  0x9e   : > { %3444 = vmatprep.subr.bf16.mxu0 %v3647_v20  ;;  %3412 = vmatprep.mubr.bf16.mxu1 %v3633_v17 }
  0xa0   : > { %3365 = vmatmul.mubr.bf16.gmra.mrb[8].mxu0 %v3634_v22 }
  0xa1   : > { %3368 = vmatprep.mubr.bf16.mxu0 %v3635_v23  ;;  %3445 = vmatpush3.bf16.msra.mxu0 %v3647_v20 }
  0xa2   : > { %3446 = vmatprep.subr.bf16.mxu0 %v3648_v24 }
  0xa5   : > { %3447 = vmatpush3.bf16.msra.mxu0 %v3648_v24  ;;  %3413 = vmatmul.mubr.bf16.gmra.mrb[8].mxu1 %v3634_v22 }
  0xa6   : > { %3448 = vmatprep.subr.bf16.mxu0 %v3651_v26  ;;  %3416 = vmatprep.mubr.bf16.mxu1 %v3635_v23 }
  0xa8   : > { %3369 = vmatmul.mubr.bf16.gmra.mrb[12].mxu0 %v3636_v28 }
  0xa9   : > { %3372 = vmatprep.mubr.bf16.mxu0 %v3637_v29  ;;  %3449 = vmatpush3.bf16.msra.mxu0 %v3651_v26 }
  0xaa   : > { %3450 = vmatprep.subr.bf16.mxu0 %v3652_v30 }
  0xad   : > { %3451 = vmatpush3.bf16.msra.mxu0 %v3652_v30  ;;  %3417 = vmatmul.mubr.bf16.gmra.mrb[12].mxu1 %v3636_v28 }
  0xae   : > { %3420 = vmatprep.mubr.bf16.mxu1 %v3637_v29 }
  0xb0   : > { %3373 = vmatmul.mubr.bf16.gmra.mrb[16].mxu0 %v3639_v33 }
  0xb1   : > { %3376 = vmatprep.mubr.bf16.mxu0 %v3641_v34 }
  0xb5   : > { %3421 = vmatmul.mubr.bf16.gmra.mrb[16].mxu1 %v3639_v33 }
  0xb6   : > { %3424 = vmatprep.mubr.bf16.mxu1 %v3641_v34 }
  0xb8   : > { %3377 = vmatmul.mubr.bf16.gmra.mrb[20].mxu0 %v3642_v35 }
  0xb9   : > { %3380 = vmatprep.mubr.bf16.mxu0 %v3645_v36 }
  0xbd   : > { %3425 = vmatmul.mubr.bf16.gmra.mrb[20].mxu1 %v3642_v35 }
  0xbe   : > { %3428 = vmatprep.mubr.bf16.mxu1 %v3645_v36 }
  0xc0   : > { %3381 = vmatmul.mubr.bf16.gmra.mrb[24].mxu0 %v3646_v37 }
  0xc1   : > { %3384 = vmatprep.mubr.bf16.mxu0 %v3649_v38 }
  0xc5   : > { %3429 = vmatmul.mubr.bf16.gmra.mrb[24].mxu1 %v3646_v37 }
  0xc6   : > { %3432 = vmatprep.mubr.bf16.mxu1 %v3649_v38 }
  0xc8   : > { %3385 = vmatmul.mubr.bf16.gmra.mrb[28].mxu0 %v3650_v40 }
  0xc9   : > { %3452 = vmatprep.mubr.bf16.mxu0 %v953_v39 }
  0xcd   : > { %3433 = vmatmul.mubr.bf16.gmra.mrb[28].mxu1 %v3650_v40 }
  0xd0   : > { %3453 = vmatmul.mubr.bf16.vlgmr.msra.gmra.mrb[32].mxu0 %v955_v41 }
  0xd1   : > { %3456 = vmatprep.mubr.bf16.mxu0 %v957_v42 }
  0xd8   : > { %3457 = vmatmul.mubr.bf16.gmra.mrb[36].mxu0 %v959_v43 }
  0xd9   : > { %3460 = vmatprep.mubr.bf16.mxu0 %v961_v44 }
  0xe0   : > { %3461 = vmatmul.mubr.bf16.gmra.mrb[40].mxu0 %v963_v45 }
  0xe1   : > { %3464 = vmatprep.mubr.bf16.mxu0 %v965_v46 }
  0xe8   : > { %3465 = vmatmul.mubr.bf16.gmra.mrb[44].mxu0 %v967_v47 }
  0xe9   : > { %3468 = vmatprep.mubr.bf16.mxu0 %v969_v48 }
  0xf0   : > { %3469 = vmatmul.mubr.bf16.gmra.mrb[48].mxu0 %v971_v49 }
  0xf1   : > { %3472 = vmatprep.mubr.bf16.mxu0 %v973_v50 }
  0xf8   : > { %3473 = vmatmul.mubr.bf16.gmra.mrb[52].mxu0 %v975_v51 }
  0xf9   : > { %3476 = vmatprep.mubr.bf16.mxu0 %v977_v52 }
 0x100   : > { %3477 = vmatmul.mubr.bf16.gmra.mrb[56].mxu0 %v979_v53 }
 0x101   : > { %3480 = vmatprep.mubr.bf16.mxu0 %v981_v54 }
 0x108   : > { %3481 = vmatmul.mubr.bf16.gmra.mrb[60].mxu0 %v983_v55 }
 0x163   : > { %v3358_v56 = vpop.f32.mrb[0].mxu0 }
 0x164   : > { %v525_v58 = vpop.f32.mrb[1].mxu0  ;;  %v534_v60 = vadd.f32 %v3358_v56, %v4316_v57 }
 0x165   : > { %v3359_v59 = vpop.f32.mrb[2].mxu0  ;;  %v526_v63 = vadd.f32 %v4316_v57, %v525_v58 }
 0x166   : > { %v537_v61 = vadd.f32 %v3359_v59, %v4316_v57  ;;  %v528_v62 = vpop.f32.mrb[3].mxu0 }
 0x167   : > { %v529_v0 = vadd.f32 %v4316_v57, %v528_v62 }
 0x168   : > { %v653_v1 = vpack.c.bf16 %v537_v61, %v534_v60 }
 0x169   : > { %v652_v2 = vpack.c.bf16 %v529_v0, %v526_v63 }
 0x16b   : > { %v3362_v3 = vpop.f32.mrb[4].mxu0 }
 0x16c   : > { %v541_v4 = vpop.f32.mrb[5].mxu0  ;;  %v4323_v6 = vadd.f32 %v3362_v3, %v4316_v57 }
 0x16d   : > { %v3363_v5 = vpop.f32.mrb[6].mxu0  ;;  %v542_v9 = vadd.f32 %v4316_v57, %v541_v4 }
 0x16e   : > { %v4326_v7 = vadd.f32 %v3363_v5, %v4316_v57  ;;  %v544_v8 = vpop.f32.mrb[7].mxu0 }
 0x16f   : > { %v545_v10 = vadd.f32 %v4316_v57, %v544_v8 }
 0x170   : > { %v655_v11 = vpack.c.bf16 %v4326_v7, %v4323_v6 }
 0x171   : > { %v654_v12 = vpack.c.bf16 %v545_v10, %v542_v9 }
 0x173   : > { %v3366_v13 = vpop.f32.mrb[8].mxu0 }
 0x174   : > { %v557_v14 = vpop.f32.mrb[9].mxu0  ;;  %v4333_v16 = vadd.f32 %v3366_v13, %v4316_v57  ;;  %v4398_v13 = vld [vmem:[%s5165_s2] ss:$0 sm:$0xff] }
 0x175   : > { %v3367_v15 = vpop.f32.mrb[10].mxu0  ;;  %v4339_v19 = vadd.f32 %v4316_v57, %v557_v14 }
 0x176   : > { %v4336_v17 = vadd.f32 %v3367_v15, %v4316_v57  ;;  %v560_v18 = vpop.f32.mrb[11].mxu0  ;;  %v3406_v15 = vpop.f32.mrb[0].mxu1 }
 0x177   : > { %v4342_v20 = vadd.f32 %v4316_v57, %v560_v18  ;;  %v4403_v18 = vld [vmem:[%s5165_s2 + $0x2] ss:$0 sm:$0xff] }
 0x178   : > { %v657_v21 = vpack.c.bf16 %v4336_v17, %v4333_v16 }
 0x179   : > { %v656_v22 = vpack.c.bf16 %v4342_v20, %v4339_v19 }
 0x17b   : > { %v3370_v23 = vpop.f32.mrb[12].mxu0 }
 0x17c   : > { %v573_v24 = vpop.f32.mrb[13].mxu0  ;;  %v4349_v26 = vadd.f32 %v3370_v23, %v4316_v57 }
 0x17d   : > { %v3371_v25 = vpop.f32.mrb[14].mxu0  ;;  %v4355_v29 = vadd.f32 %v4316_v57, %v573_v24  ;;  %v4410_v24 = vadd.f32 %v3406_v15, %v4403_v18 }
 0x17e   : > { %v4352_v27 = vadd.f32 %v3371_v25, %v4316_v57  ;;  %v576_v28 = vpop.f32.mrb[15].mxu0  ;;  %v789_v25 = vpop.f32.mrb[1].mxu1 }
 0x17f   : > { %v4358_v30 = vadd.f32 %v4316_v57, %v576_v28 }
 0x180   : > { %v659_v31 = vpack.c.bf16 %v4352_v27, %v4349_v26 }
 0x181   : > { %v658_v32 = vpack.c.bf16 %v4358_v30, %v4355_v29 }
 0x183   : > { %v3374_v33 = vpop.f32.mrb[16].mxu0 }
 0x184   : > { %v589_v34 = vpop.f32.mrb[17].mxu0  ;;  %v598_v36 = vadd.f32 %v3374_v33, %v4316_v57 }
 0x185   : > { %v3375_v35 = vpop.f32.mrb[18].mxu0  ;;  %v590_v39 = vadd.f32 %v4316_v57, %v589_v34  ;;  %v4414_v34 = vadd.f32 %v4403_v18, %v789_v25 }
 0x186   : > { %v601_v37 = vadd.f32 %v3375_v35, %v4316_v57  ;;  %v592_v38 = vpop.f32.mrb[19].mxu0  ;;  %v3407_v35 = vpop.f32.mrb[2].mxu1 }
 0x187   : > { %v593_v40 = vadd.f32 %v4316_v57, %v592_v38  ;;  %v4418_v6 = vadd.f32 %v3407_v35, %v4403_v18  ;;  %v792_v7 = vpop.f32.mrb[3].mxu1 }
 0x188   : > { %v661_v41 = vpack.c.bf16 %v601_v37, %v598_v36  ;;  %v4422_v38 = vadd.f32 %v4403_v18, %v792_v7 }
 0x189   : > { %v660_v42 = vpack.c.bf16 %v593_v40, %v590_v39  ;;  %v3410_v39 = vpop.f32.mrb[4].mxu1 }
 0x18b   : > { %3156 = vmatprep.subr.bf16.mxu1 %v660_v42  ;;  %v3378_v43 = vpop.f32.mrb[20].mxu0  ;;  %v4429_v42 = vadd.f32 %v3410_v39, %v4403_v18 }
 0x18c   : > { %3157 = vmatpush3.bf16.xpose.msra.mxu1 %v652_v2  ;;  %v614_v44 = vadd.f32 %v3378_v43, %v4316_v57  ;;  %v605_v45 = vpop.f32.mrb[21].mxu0  ;;  %v805_v43 = vpop.f32.mrb[5].mxu1 }
 0x18d   : > { %3158 = vmatprep.subr.bf16.mxu1 %v661_v41  ;;  %v606_v46 = vadd.f32 %v4316_v57, %v605_v45  ;;  %v3379_v47 = vpop.f32.mrb[22].mxu0  ;;  %v917_v41 = vpack.c.bf16 %v4418_v6, %v4410_v24  ;;  %v916_v45 = vpack.c.bf16 %v4422_v38, %v4414_v34 }
 0x18e   : > { %v617_v48 = vadd.f32 %v3379_v47, %v4316_v57  ;;  %v608_v49 = vpop.f32.mrb[23].mxu0  ;;  %v3411_v47 = vpop.f32.mrb[6].mxu1 }
 0x18f   : > { %v609_v50 = vadd.f32 %v4316_v57, %v608_v49  ;;  %v808_v49 = vpop.f32.mrb[7].mxu1 }
 0x190   : > { %v663_v51 = vpack.c.bf16 %v617_v48, %v614_v44  ;;  %v4439_v48 = vadd.f32 %v3411_v47, %v4403_v18 }
 0x191   : > { %v662_v52 = vpack.c.bf16 %v609_v50, %v606_v46  ;;  %v4436_v46 = vadd.f32 %v4403_v18, %v805_v43 }
 0x193   : > { %v3382_v53 = vpop.f32.mrb[24].mxu0 }
 0x194   : > { %3159 = vmatpush3.bf16.xpose.msra.mxu1 %v653_v1  ;;  %v4373_v54 = vadd.f32 %v3382_v53, %v4316_v57  ;;  %v621_v55 = vpop.f32.mrb[25].mxu0 }
 0x195   : > { %3160 = vmatprep.subr.bf16.mxu1 %v662_v52  ;;  %v622_v56 = vadd.f32 %v4316_v57, %v621_v55  ;;  %v3383_v58 = vpop.f32.mrb[26].mxu0  ;;  %v3414_v52 = vpop.f32.mrb[8].mxu1  ;;  %v919_v55 = vpack.c.bf16 %v4439_v48, %v4429_v42 }
 0x196   : > { %v633_v59 = vadd.f32 %v3383_v58, %v4316_v57  ;;  %v624_v60 = vpop.f32.mrb[27].mxu0  ;;  %v821_v58 = vpop.f32.mrb[9].mxu1 }
 0x197   : > { %v625_v61 = vadd.f32 %v4316_v57, %v624_v60  ;;  %v4458_v19 = vadd.f32 %v4403_v18, %v821_v58  ;;  %v3415_v20 = vpop.f32.mrb[10].mxu1 }
 0x198   : > { %v665_v62 = vpack.c.bf16 %v633_v59, %v4373_v54 }
 0x199   : > { %v664_v63 = vpack.c.bf16 %v625_v61, %v622_v56  ;;  %v4452_v56 = vadd.f32 %v3414_v52, %v4403_v18 }
 0x19b   : > { %v3386_v0 = vpop.f32.mrb[28].mxu0 }
 0x19c   : > { %3161 = vmatpush3.bf16.xpose.msra.mxu1 %v654_v12  ;;  %v4380_v1 = vadd.f32 %v3386_v0, %v4316_v57  ;;  %v637_v2 = vpop.f32.mrb[29].mxu0  ;;  %v4462_v0 = vadd.f32 %v3415_v20, %v4403_v18 }
 0x19d   : > { %3162 = vmatprep.subr.bf16.mxu1 %v663_v51  ;;  %v4383_v3 = vadd.f32 %v4316_v57, %v637_v2  ;;  %v3387_v4 = vpop.f32.mrb[30].mxu0  ;;  %v4443_v51 = vadd.f32 %v4403_v18, %v808_v49  ;;  %v824_v2 = vpop.f32.mrb[11].mxu1 }
 0x19e   : > { %v4386_v5 = vadd.f32 %v3387_v4, %v4316_v57  ;;  %v640_v8 = vpop.f32.mrb[31].mxu0  ;;  %v921_v15 = vpack.c.bf16 %v4462_v0, %v4452_v56 }
 0x19f   : > { %v4389_v9 = vadd.f32 %v4316_v57, %v640_v8  ;;  %v918_v61 = vpack.c.bf16 %v4443_v51, %v4436_v46  ;;  %v3418_v8 = vpop.f32.mrb[12].mxu1 }
 0x1a0   : > { %v667_v10 = vpack.c.bf16 %v4386_v5, %v4380_v1 }
 0x1a1   : > { %v666_v12 = vpack.c.bf16 %v4389_v9, %v4383_v3 }
 0x1a3   : > { %v3454_v14 = vpop.f32.mrb[32].mxu0 }
 0x1a4   : > { %3163 = vmatpush3.bf16.xpose.msra.mxu1 %v655_v11  ;;  %v1195_v57 = vadd.f32 %v3454_v14, %v4398_v13  ;;  %v1186_v23 = vpop.f32.mrb[33].mxu0 }
 0x1a5   : > { %3164 = vmatprep.subr.bf16.mxu1 %v664_v63  ;;  %v1187_v28 = vadd.f32 %v4398_v13, %v1186_v23  ;;  %v3455_v33 = vpop.f32.mrb[34].mxu0  ;;  %v837_v23 = vpop.f32.mrb[13].mxu1 }
 0x1a6   : > { %v1198_v36 = vadd.f32 %v3455_v33, %v4398_v13  ;;  %v1189_v37 = vpop.f32.mrb[35].mxu0  ;;  %v4480_v33 = vadd.f32 %v4403_v18, %v837_v23  ;;  %v3419_v35 = vpop.f32.mrb[14].mxu1 }
 0x1a7   : > { %v1190_v11 = vadd.f32 %v4398_v13, %v1189_v37  ;;  %v840_v37 = vpop.f32.mrb[15].mxu1 }
 0x1a8   : > { %v4424_v40 = vpack.c.bf16 %v1198_v36, %v1195_v57  ;;  %v4473_v57 = vadd.f32 %v3418_v8, %v4403_v18  ;;  %v4483_v36 = vadd.f32 %v3419_v35, %v4403_v18  ;;  %v3422_v39 = vpop.f32.mrb[16].mxu1 }
 0x1a9   : > { %v4431_v44 = vpack.c.bf16 %v1190_v11, %v1187_v28  ;;  %v4486_v11 = vadd.f32 %v4403_v18, %v840_v37  ;;  %v853_v52 = vpop.f32.mrb[17].mxu1 }
 0x1aa   : > { %v923_v49 = vpack.c.bf16 %v4483_v36, %v4473_v57  ;;  %v854_v17 = vadd.f32 %v4403_v18, %v853_v52 }
 0x1ab   : > { %3172 = vmatprep.mubr.bf16.mxu1 %v4431_v44  ;;  %v3458_v50 = vpop.f32.mrb[36].mxu0  ;;  %v922_v16 = vpack.c.bf16 %v4486_v11, %v4480_v33 }
 0x1ac   : > { %3165 = vmatpush3.bf16.xpose.msra.mxu1 %v656_v22  ;;  %v1211_v53 = vadd.f32 %v3458_v50, %v4398_v13  ;;  %v1202_v54 = vpop.f32.mrb[37].mxu0  ;;  %v862_v50 = vadd.f32 %v3422_v39, %v4403_v18 }
 0x1ad   : > { %3166 = vmatprep.subr.bf16.mxu1 %v665_v62  ;;  %v1203_v59 = vadd.f32 %v4398_v13, %v1202_v54  ;;  %v3459_v60 = vpop.f32.mrb[38].mxu0  ;;  %v4466_v62 = vadd.f32 %v4403_v18, %v824_v2 }
 0x1ae   : > { %v1214_v22 = vadd.f32 %v3459_v60, %v4398_v13  ;;  %v1205_v63 = vpop.f32.mrb[39].mxu0 }
 0x1af   : > { %v1206_v4 = vadd.f32 %v4398_v13, %v1205_v63  ;;  %v920_v28 = vpack.c.bf16 %v4466_v62, %v4458_v19 }
 0x1b0   : > { %v4468_v14 = vpack.c.bf16 %v1214_v22, %v1211_v53 }
 0x1b1   : > { %v4475_v25 = vpack.c.bf16 %v1206_v4, %v1203_v59 }
 0x1b3   : > { %v3462_v7 = vpop.f32.mrb[40].mxu0 }
 0x1b4   : > { %3167 = vmatpush3.bf16.xpose.msra.mxu1 %v657_v21  ;;  %v1227_v43 = vadd.f32 %v3462_v7, %v4398_v13  ;;  %v1218_v47 = vpop.f32.mrb[41].mxu0  ;;  %v3423_v21 = vpop.f32.mrb[18].mxu1 }
 0x1b5   : > { %3168 = vmatprep.subr.bf16.mxu1 %v666_v12  ;;  %v1219_v53 = vadd.f32 %v4398_v13, %v1218_v47  ;;  %v3463_v54 = vpop.f32.mrb[42].mxu0  ;;  %v865_v60 = vadd.f32 %v3423_v21, %v4403_v18  ;;  %v856_v20 = vpop.f32.mrb[19].mxu1 }
 0x1b6   : > { %v1230_v58 = vadd.f32 %v3463_v54, %v4398_v13  ;;  %v1221_v59 = vpop.f32.mrb[43].mxu0  ;;  %v857_v3 = vadd.f32 %v4403_v18, %v856_v20  ;;  %v3426_v9 = vpop.f32.mrb[20].mxu1 }
 0x1b7   : > { %v1222_v22 = vadd.f32 %v4398_v13, %v1221_v59  ;;  %v925_v63 = vpack.c.bf16 %v865_v60, %v862_v50  ;;  %v878_v2 = vadd.f32 %v3426_v9, %v4403_v18  ;;  %v869_v4 = vpop.f32.mrb[21].mxu1 }
 0x1b8   : > { %v4506_v12 = vpack.c.bf16 %v1230_v58, %v1227_v43  ;;  %v924_v23 = vpack.c.bf16 %v857_v3, %v854_v17  ;;  %v870_v35 = vadd.f32 %v4403_v18, %v869_v4  ;;  %v3427_v37 = vpop.f32.mrb[22].mxu1 }
 0x1b9   : > { %v4509_v8 = vpack.c.bf16 %v1222_v22, %v1219_v53  ;;  %v881_v7 = vadd.f32 %v3427_v37, %v4403_v18  ;;  %v872_v39 = vpop.f32.mrb[23].mxu1 }
 0x1ba   : > { %3204 = vmatprep.subr.bf16.mxu0 %v924_v23  ;;  %v873_v52 = vadd.f32 %v4403_v18, %v872_v39  ;;  %v3430_v54 = vpop.f32.mrb[24].mxu1 }
 0x1bb   : > { %v3466_v47 = vpop.f32.mrb[44].mxu0  ;;  %3205 = vmatpush3.bf16.msra.mxu0 %v916_v45  ;;  %v927_v53 = vpack.c.bf16 %v881_v7, %v878_v2  ;;  %v894_v17 = vadd.f32 %v3430_v54, %v4403_v18  ;;  %v885_v21 = vpop.f32.mrb[25].mxu1 }
 0x1bc   : > { %3169 = vmatpush3.bf16.xpose.msra.mxu1 %v658_v32  ;;  %v1243_v43 = vadd.f32 %v3466_v47, %v4398_v13  ;;  %v1234_v50 = vpop.f32.mrb[45].mxu0  ;;  %v926_v29 = vpack.c.bf16 %v873_v52, %v870_v35  ;;  %3206 = vmatprep.subr.bf16.mxu0 %v925_v63  ;;  %v886_v30 = vadd.f32 %v4403_v18, %v885_v21  ;;  %v3431_v32 = vpop.f32.mrb[26].mxu1 }
 0x1bd   : > { %3170 = vmatprep.subr.bf16.mxu1 %v667_v10  ;;  %v1235_v58 = vadd.f32 %v4398_v13, %v1234_v50  ;;  %v3467_v59 = vpop.f32.mrb[46].mxu0  ;;  %v897_v38 = vadd.f32 %v3431_v32, %v4403_v18  ;;  %v888_v45 = vpop.f32.mrb[27].mxu1 }
 0x1be   : > { %v1246_v60 = vadd.f32 %v3467_v59, %v4398_v13  ;;  %v1237_v34 = vpop.f32.mrb[47].mxu0  ;;  %v889_v22 = vadd.f32 %v4403_v18, %v888_v45  ;;  %v3434_v10 = vpop.f32.mrb[28].mxu1 }
 0x1bf   : > { %v1238_v20 = vadd.f32 %v4398_v13, %v1237_v34  ;;  %3207 = vmatpush3.bf16.msra.mxu0 %v917_v41  ;;  %v929_v5 = vpack.c.bf16 %v897_v38, %v894_v17  ;;  %v910_v63 = vadd.f32 %v3434_v10, %v4403_v18  ;;  %v901_v2 = vpop.f32.mrb[29].mxu1 }
 0x1c0   : > { %v4531_v1 = vpack.c.bf16 %v1246_v60, %v1243_v43  ;;  %3208 = vmatprep.subr.bf16.mxu0 %v926_v29  ;;  %v928_v9 = vpack.c.bf16 %v889_v22, %v886_v30  ;;  %v902_v4 = vadd.f32 %v4403_v18, %v901_v2  ;;  %v3435_v23 = vpop.f32.mrb[30].mxu1 }
 0x1c1   : > { %v4536_v3 = vpack.c.bf16 %v1238_v20, %v1235_v58  ;;  %v913_v37 = vadd.f32 %v3435_v23, %v4403_v18  ;;  %v904_v7 = vpop.f32.mrb[31].mxu1 }
 0x1c2   : > { %v905_v41 = vadd.f32 %v4403_v18, %v904_v7 }
 0x1c3   : > { %v3470_v35 = vpop.f32.mrb[48].mxu0  ;;  %3209 = vmatpush3.bf16.msra.mxu0 %v918_v61  ;;  %v931_v52 = vpack.c.bf16 %v913_v37, %v910_v63 }
 0x1c4   : > { %3171 = vmatpush3.bf16.xpose.msra.mxu1 %v659_v31  ;;  %v1259_v24 = vadd.f32 %v3470_v35, %v4398_v13  ;;  %v1250_v6 = vpop.f32.mrb[49].mxu0  ;;  %3210 = vmatprep.subr.bf16.mxu0 %v927_v53  ;;  %v930_v50 = vpack.c.bf16 %v905_v41, %v902_v4 }
 0x1c5   : > { %v1251_v39 = vadd.f32 %v4398_v13, %v1250_v6  ;;  %v3471_v47 = vpop.f32.mrb[50].mxu0 }
 0x1c6   : > { %v1262_v54 = vadd.f32 %v3471_v47, %v4398_v13  ;;  %v1253_v43 = vpop.f32.mrb[51].mxu0 }
 0x1c7   : > { %v1254_v26 = vadd.f32 %v4398_v13, %v1253_v43  ;;  %3211 = vmatpush3.bf16.msra.mxu0 %v919_v55 }
 0x1c8   : > { %v1322_v27 = vpack.c.bf16 %v1262_v54, %v1259_v24  ;;  %3212 = vmatprep.subr.bf16.mxu0 %v928_v9 }
 0x1c9   : > { %v1321_v31 = vpack.c.bf16 %v1254_v26, %v1251_v39 }
 0x1cb   : > { %3173 = vmatmul.mubr.bf16.vlgmr.msra.gmra.mrb[32].mxu1 %v4431_v44  ;;  %v3474_v18 = vpop.f32.mrb[52].mxu0  ;;  %3213 = vmatpush3.bf16.msra.mxu0 %v920_v28 }
 0x1cc   : > { %3174 = vmatprep.mubr.bf16.mxu1 %v4424_v40  ;;  %v1275_v46 = vadd.f32 %v3474_v18, %v4398_v13  ;;  %v1266_v51 = vpop.f32.mrb[53].mxu0  ;;  %3214 = vmatprep.subr.bf16.mxu0 %v929_v5 }
 0x1cd   : > { %v1267_v61 = vadd.f32 %v4398_v13, %v1266_v51  ;;  %v3475_v53 = vpop.f32.mrb[54].mxu0 }
 0x1ce   : > { %v1278_v42 = vadd.f32 %v3475_v53, %v4398_v13  ;;  %v1269_v48 = vpop.f32.mrb[55].mxu0 }
 0x1cf   : > { %v1270_v55 = vadd.f32 %v4398_v13, %v1269_v48  ;;  %3215 = vmatpush3.bf16.msra.mxu0 %v921_v15 }
 0x1d0   : > { %v1324_v44 = vpack.c.bf16 %v1278_v42, %v1275_v46  ;;  %3216 = vmatprep.subr.bf16.mxu0 %v930_v50 }
 0x1d1   : > { %v1323_v17 = vpack.c.bf16 %v1270_v55, %v1267_v61 }
 0x1d3   : > { %3175 = vmatmul.mubr.bf16.gmra.mrb[36].mxu1 %v4424_v40  ;;  %3217 = vmatpush3.bf16.msra.mxu0 %v922_v16  ;;  %v3478_v56 = vpop.f32.mrb[56].mxu0 }
 0x1d4   : > { %3176 = vmatprep.mubr.bf16.mxu1 %v4475_v25  ;;  %3218 = vmatprep.subr.bf16.mxu0 %v931_v52  ;;  %v1291_v19 = vadd.f32 %v3478_v56, %v4398_v13  ;;  %v1282_v0 = vpop.f32.mrb[57].mxu0 }
 0x1d5   : > { %v1283_v40 = vadd.f32 %v4398_v13, %v1282_v0  ;;  %v3479_v62 = vpop.f32.mrb[58].mxu0 }
 0x1d6   : > { %v1294_v15 = vadd.f32 %v3479_v62, %v4398_v13  ;;  %v1285_v28 = vpop.f32.mrb[59].mxu0 }
 0x1d7   : > { %3219 = vmatpush3.bf16.msra.mxu0 %v923_v49  ;;  %v1286_v33 = vadd.f32 %v4398_v13, %v1285_v28 }
 0x1d8   : > { %v1326_v11 = vpack.c.bf16 %v1294_v15, %v1291_v19 }
 0x1d9   : > { %v1325_v57 = vpack.c.bf16 %v1286_v33, %v1283_v40 }
 0x1db   : > { %3177 = vmatmul.mubr.bf16.gmra.mrb[40].mxu1 %v4475_v25  ;;  %v3482_v25 = vpop.f32.mrb[60].mxu0 }
 0x1dc   : > { %3178 = vmatprep.mubr.bf16.mxu1 %v4468_v14  ;;  %v1307_v36 = vadd.f32 %v3482_v25, %v4398_v13  ;;  %v1298_v49 = vpop.f32.mrb[61].mxu0 }
 0x1dd   : > { %v1299_v16 = vadd.f32 %v4398_v13, %v1298_v49  ;;  %v3483_v21 = vpop.f32.mrb[62].mxu0 }
 0x1de   : > { %v1310_v58 = vadd.f32 %v3483_v21, %v4398_v13  ;;  %v1301_v59 = vpop.f32.mrb[63].mxu0 }
 0x1df   : > { %v1302_v29 = vadd.f32 %v4398_v13, %v1301_v59 }
 0x1e1   : > { %v1327_v30 = vpack.c.bf16 %v1302_v29, %v1299_v16 }
 0x1e3   : > { %3179 = vmatmul.mubr.bf16.gmra.mrb[44].mxu1 %v4468_v14  ;;  %v1328_v14 = vpack.c.bf16 %v1310_v58, %v1307_v36 }
 0x1e4   : > { %3180 = vmatprep.mubr.bf16.mxu1 %v4509_v8 }
 0x1eb   : > { %3181 = vmatmul.mubr.bf16.gmra.mrb[48].mxu1 %v4509_v8 }
 0x1ec   : > { %3182 = vmatprep.mubr.bf16.mxu1 %v4506_v12 }
 0x1f3   : > { %3183 = vmatmul.mubr.bf16.gmra.mrb[52].mxu1 %v4506_v12 }
 0x1f4   : > { %3184 = vmatprep.mubr.bf16.mxu1 %v4536_v3 }
 0x1fb   : > { %3185 = vmatmul.mubr.bf16.gmra.mrb[56].mxu1 %v4536_v3 }
 0x1fc   : > { %3186 = vmatprep.mubr.bf16.mxu1 %v4531_v1 }
 0x203   : > { %3187 = vmatmul.mubr.bf16.gmra.mrb[60].mxu1 %v4531_v1 }
 0x204   : > { %3188 = vmatprep.mubr.bf16.mxu1 %v1321_v31 }
 0x20b   : > { %3189 = vmatmul.mubr.bf16.gmra.mrb[64].mxu1 %v1321_v31 }
 0x20c   : > { %3190 = vmatprep.mubr.bf16.mxu1 %v1322_v27 }
 0x213   : > { %3191 = vmatmul.mubr.bf16.gmra.mrb[68].mxu1 %v1322_v27 }
 0x214   : > { %3192 = vmatprep.mubr.bf16.mxu1 %v1323_v17 }
 0x21b   : > { %3193 = vmatmul.mubr.bf16.gmra.mrb[72].mxu1 %v1323_v17 }
 0x21c   : > { %3194 = vmatprep.mubr.bf16.mxu1 %v1324_v44 }
 0x223   : > { %3195 = vmatmul.mubr.bf16.gmra.mrb[76].mxu1 %v1324_v44 }
 0x224   : > { %3196 = vmatprep.mubr.bf16.mxu1 %v1325_v57 }
 0x22b   : > { %3197 = vmatmul.mubr.bf16.gmra.mrb[80].mxu1 %v1325_v57 }
 0x22c   : > { %3198 = vmatprep.mubr.bf16.mxu1 %v1326_v11 }
 0x233   : > { %3199 = vmatmul.mubr.bf16.gmra.mrb[84].mxu1 %v1326_v11 }
 0x234   : > { %3200 = vmatprep.mubr.bf16.mxu1 %v1327_v30 }
 0x23b   : > { %3201 = vmatmul.mubr.bf16.gmra.mrb[88].mxu1 %v1327_v30 }
 0x23c   : > { %3202 = vmatprep.mubr.bf16.mxu1 %v1328_v14 }
 0x243   : > { %3203 = vmatmul.mubr.bf16.gmra.mrb[92].mxu1 %v1328_v14 }
 0x29e   : > { %v4594_v13 = vpop.f32.mrb[32].mxu1 }
 0x29f   : > { %v4596_v12 = vpop.f32.mrb[33].mxu1 }
 0x2a0   : > { %v4598_v8 = vpop.f32.mrb[34].mxu1  ;;  %v1538_v32 = vmax.f32 %v4594_v13, %v4596_v12 }
 0x2a1   : > { %v4602_v60 = vpop.f32.mrb[35].mxu1 }
 0x2a2   : > { %1539 = vmax.xlane.f32.xlu0 %v1538_v32  ;;  %v1541_v34 = vmax.f32 %v4598_v8, %v4602_v60 }
 0x2a6   : > { %1542 = vmax.xlane.f32.xlu0 %v1541_v34  ;;  %v4606_v38 = vpop.f32.mrb[36].mxu1 }
 0x2a7   : > { %v4608_v45 = vpop.f32.mrb[37].mxu1 }
 0x2a8   : > { %v4610_v20 = vpop.f32.mrb[38].mxu1  ;;  %v1544_v22 = vmax.f32 %v4606_v38, %v4608_v45 }
 0x2a9   : > { %v4614_v1 = vpop.f32.mrb[39].mxu1 }
 0x2aa   : > { %1545 = vmax.xlane.f32.xlu1 %v1544_v22  ;;  %v1547_v5 = vmax.f32 %v4610_v20, %v4614_v1 }
 0x2ae   : > { %1548 = vmax.xlane.f32.xlu1 %v1547_v5  ;;  %v4618_v10 = vpop.f32.mrb[40].mxu1 }
 0x2af   : > { %v4620_v3 = vpop.f32.mrb[41].mxu1 }
 0x2b0   : > { %v4622_v9 = vpop.f32.mrb[42].mxu1  ;;  %v1550_v63 = vmax.f32 %v4618_v10, %v4620_v3 }
 0x2b1   : > { %v4626_v2 = vpop.f32.mrb[43].mxu1 }
 0x2b2   : > { %1551 = vmax.xlane.f32.xlu0 %v1550_v63  ;;  %v1553_v4 = vmax.f32 %v4622_v9, %v4626_v2 }
 0x2b4   : > { %1554 = vmax.xlane.f32.xlu1 %v1553_v4 }
 0x2b6   : > { %v4630_v23 = vpop.f32.mrb[44].mxu1 }
 0x2b7   : > { %v4632_v35 = vpop.f32.mrb[45].mxu1 }
 0x2b8   : > { %v4634_v37 = vpop.f32.mrb[46].mxu1  ;;  %v1556_v7 = vmax.f32 %v4630_v23, %v4632_v35 }
 0x2b9   : > { %v4638_v24 = vpop.f32.mrb[47].mxu1 }
 0x2ba   : > { %1557 = vmax.xlane.f32.xlu0 %v1556_v7  ;;  %v1559_v6 = vmax.f32 %v4634_v37, %v4638_v24 }
 0x2bc   : > { %1560 = vmax.xlane.f32.xlu1 %v1559_v6 }
 0x2be   : > { %v4642_v41 = vpop.f32.mrb[48].mxu1 }
 0x2bf   : > { %v4644_v39 = vpop.f32.mrb[49].mxu1 }
 0x2c0   : > { %v4646_v47 = vpop.f32.mrb[50].mxu1  ;;  %v1562_v52 = vmax.f32 %v4642_v41, %v4644_v39 }
 0x2c1   : > { %v4650_v54 = vpop.f32.mrb[51].mxu1 }
 0x2c2   : > { %1563 = vmax.xlane.f32.xlu0 %v1562_v52  ;;  %v1565_v43 = vmax.f32 %v4646_v47, %v4650_v54 }
 0x2c4   : > { %1566 = vmax.xlane.f32.xlu1 %v1565_v43 }
 0x2c6   : > { %v4654_v50 = vpop.f32.mrb[52].mxu1 }
 0x2c7   : > { %v4656_v26 = vpop.f32.mrb[53].mxu1 }
 0x2c8   : > { %v4658_v27 = vpop.f32.mrb[54].mxu1  ;;  %v1568_v31 = vmax.f32 %v4654_v50, %v4656_v26 }
 0x2c9   : > { %v4662_v18 = vpop.f32.mrb[55].mxu1 }
 0x2ca   : > { %1569 = vmax.xlane.f32.xlu0 %v1568_v31  ;;  %v1571_v46 = vmax.f32 %v4658_v27, %v4662_v18 }
 0x2cc   : > { %1572 = vmax.xlane.f32.xlu1 %v1571_v46 }
 0x2ce   : > { %v4666_v51 = vpop.f32.mrb[56].mxu1 }
 0x2cf   : > { %v4668_v61 = vpop.f32.mrb[57].mxu1 }
 0x2d0   : > { %v4670_v53 = vpop.f32.mrb[58].mxu1  ;;  %v1574_v42 = vmax.f32 %v4666_v51, %v4668_v61 }
 0x2d1   : > { %v4674_v48 = vpop.f32.mrb[59].mxu1 }
 0x2d2   : > { %1575 = vmax.xlane.f32.xlu0 %v1574_v42  ;;  %v1577_v55 = vmax.f32 %v4670_v53, %v4674_v48 }
 0x2d4   : > { %1578 = vmax.xlane.f32.xlu1 %v1577_v55 }
 0x2d6   : > { %v4678_v44 = vpop.f32.mrb[60].mxu1 }
 0x2d7   : > { %v4680_v17 = vpop.f32.mrb[61].mxu1 }
 0x2d8   : > { %v4682_v56 = vpop.f32.mrb[62].mxu1  ;;  %v1580_v19 = vmax.f32 %v4678_v44, %v4680_v17 }
 0x2d9   : > { %v4686_v0 = vpop.f32.mrb[63].mxu1 }
 0x2da   : > { %1581 = vmax.xlane.f32.xlu0 %v1580_v19  ;;  %v1583_v40 = vmax.f32 %v4682_v56, %v4686_v0 }
 0x2dc   : > { %1584 = vmax.xlane.f32.xlu1 %v1583_v40 }
 0x2de   : > { %v4690_v62 = vpop.f32.mrb[64].mxu1 }
 0x2df   : > { %v4692_v15 = vpop.f32.mrb[65].mxu1 }
 0x2e0   : > { %5200 = vst [vmem:[#allocation14_spill] sm:$0xff] %v4692_v15  ;;  %v4694_v28 = vpop.f32.mrb[66].mxu1  ;;  %v1586_v33 = vmax.f32 %v4690_v62, %v4692_v15 }
 0x2e1   : > { %5201 = vst [vmem:[#allocation15_spill] sm:$0xff] %v4694_v28  ;;  %v4698_v11 = vpop.f32.mrb[67].mxu1 }
 0x2e2   : > { %5202 = vst [vmem:[#allocation16_spill] sm:$0xff] %v4698_v11  ;;  %1587 = vmax.xlane.f32.xlu0 %v1586_v33  ;;  %v1589_v57 = vmax.f32 %v4694_v28, %v4698_v11 }
 0x2e4   : > { %1590 = vmax.xlane.f32.xlu1 %v1589_v57 }
 0x2e6   : > { %v4702_v25 = vpop.f32.mrb[68].mxu1 }
 0x2e7   : > { %5203 = vst [vmem:[#allocation17_spill] sm:$0xff] %v4702_v25  ;;  %v4704_v36 = vpop.f32.mrb[69].mxu1 }
 0x2e8   : > { %5204 = vst [vmem:[#allocation18_spill] sm:$0xff] %v4704_v36  ;;  %v4706_v49 = vpop.f32.mrb[70].mxu1  ;;  %v1592_v16 = vmax.f32 %v4702_v25, %v4704_v36 }
 0x2e9   : > { %5205 = vst [vmem:[#allocation19_spill] sm:$0xff] %v4706_v49  ;;  %v4710_v21 = vpop.f32.mrb[71].mxu1 }
 0x2ea   : > { %5206 = vst [vmem:[#allocation20_spill] sm:$0xff] %v4710_v21  ;;  %1593 = vmax.xlane.f32.xlu0 %v1592_v16  ;;  %v1595_v58 = vmax.f32 %v4706_v49, %v4710_v21 }
 0x2ec   : > { %1596 = vmax.xlane.f32.xlu1 %v1595_v58 }
 0x2ee   : > { %v4714_v59 = vpop.f32.mrb[72].mxu1 }
 0x2ef   : > { %5207 = vst [vmem:[#allocation21_spill] sm:$0xff] %v4714_v59  ;;  %v4716_v29 = vpop.f32.mrb[73].mxu1 }
 0x2f0   : > { %5208 = vst [vmem:[#allocation22_spill] sm:$0xff] %v4716_v29  ;;  %v4718_v14 = vpop.f32.mrb[74].mxu1  ;;  %v1598_v30 = vmax.f32 %v4714_v59, %v4716_v29 }
 0x2f1   : > { %5209 = vst [vmem:[#allocation23_spill] sm:$0xff] %v4718_v14  ;;  %v4722_v32 = vpop.f32.mrb[75].mxu1 }
 0x2f2   : > { %5210 = vst [vmem:[#allocation24_spill] sm:$0xff] %v4722_v32  ;;  %1599 = vmax.xlane.f32.xlu0 %v1598_v30  ;;  %v1601_v34 = vmax.f32 %v4718_v14, %v4722_v32 }
 0x2f4   : > { %1602 = vmax.xlane.f32.xlu1 %v1601_v34 }
 0x2f6   : > { %v4726_v22 = vpop.f32.mrb[76].mxu1 }
 0x2f7   : > { %5211 = vst [vmem:[#allocation25_spill] sm:$0xff] %v4726_v22  ;;  %v4728_v5 = vpop.f32.mrb[77].mxu1 }
 0x2f8   : > { %5212 = vst [vmem:[#allocation26_spill] sm:$0xff] %v4728_v5  ;;  %v4730_v63 = vpop.f32.mrb[78].mxu1  ;;  %v1604_v4 = vmax.f32 %v4726_v22, %v4728_v5 }
 0x2f9   : > { %5213 = vst [vmem:[#allocation27_spill] sm:$0xff] %v4730_v63  ;;  %v4734_v7 = vpop.f32.mrb[79].mxu1 }
 0x2fa   : > { %5214 = vst [vmem:[#allocation28_spill] sm:$0xff] %v4734_v7  ;;  %1605 = vmax.xlane.f32.xlu0 %v1604_v4  ;;  %v1607_v6 = vmax.f32 %v4730_v63, %v4734_v7 }
 0x2fc   : > { %1608 = vmax.xlane.f32.xlu1 %v1607_v6 }
 0x2fe   : > { %v4738_v52 = vpop.f32.mrb[80].mxu1 }
 0x2ff   : > { %v4740_v43 = vpop.f32.mrb[81].mxu1 }
 0x300   : > { %v4742_v31 = vpop.f32.mrb[82].mxu1 }
 0x301   : > { %v4746_v42 = vpop.f32.mrb[83].mxu1 }
 0x306   : > { %v4750_v19 = vpop.f32.mrb[84].mxu1 }
 0x307   : > { %v4752_v40 = vpop.f32.mrb[85].mxu1 }
 0x308   : > { %v4754_v33 = vpop.f32.mrb[86].mxu1 }
 0x309   : > { %v4758_v16 = vpop.f32.mrb[87].mxu1 }
 0x30e   : > { %v4762_v30 = vpop.f32.mrb[88].mxu1 }
 0x30f   : > { %v4764_v34 = vpop.f32.mrb[89].mxu1 }
 0x310   : > { %v4766_v4 = vpop.f32.mrb[90].mxu1 }
 0x311   : > { %v4770_v55 = vpop.f32.mrb[91].mxu1 }
 0x316   : > { %v4774_v57 = vpop.f32.mrb[92].mxu1 }
 0x317   : > { %v4776_v7 = vpop.f32.mrb[93].mxu1 }
 0x318   : > { %v4778_v63 = vpop.f32.mrb[94].mxu1 }
 0x319   : > { %v4782_v5 = vpop.f32.mrb[95].mxu1 }
 0x32f   : > { %v1540_v6 = vpop.xlane.xlu0 %1539 }
 0x330   : > { %v1634_v14 = vsub.f32 %v4594_v13, %v1540_v6  ;;  %v1635_v46 = vsub.f32 %v4596_v12, %v1540_v6 }
 0x333   : > { %v1543_v32 = vpop.xlane.xlu0 %1542 }
 0x334   : > { %v1636_v29 = vsub.f32 %v4598_v8, %v1543_v32  ;;  %v1637_v59 = vsub.f32 %v4602_v60, %v1543_v32 }
 0x336   : > { %v1698_v21 = vpack.c.bf16 %v1636_v29, %v1634_v14  ;;  %v1699_v49 = vpack.c.bf16 %v1637_v59, %v1635_v46 }
 0x337   : > { %v1546_v36 = vpop.xlane.xlu1 %1545 }
 0x338   : > { %v1731_v25 = vmul.bf16 1069105081, %v1698_v21  ;;  %v1734_v58 = vmul.bf16 1069105081, %v1699_v49  ;;  %v1638_v22 = vsub.f32 %v4606_v38, %v1546_v36  ;;  %v1639_v28 = vsub.f32 %v4608_v45, %v1546_v36 }
 0x33a   : > { %3701 = vpow.bf16 %v1731_v25 }
 0x33b   : > { %3703 = vpow.bf16 %v1734_v58  ;;  %v1549_v11 = vpop.xlane.xlu1 %1548 }
 0x33c   : > { %v1640_v13 = vsub.f32 %v4610_v20, %v1549_v11  ;;  %v1641_v12 = vsub.f32 %v4614_v1, %v1549_v11 }
 0x33e   : > { %v1700_v6 = vpack.c.bf16 %v1640_v13, %v1638_v22  ;;  %v1701_v8 = vpack.c.bf16 %v1641_v12, %v1639_v28 }
 0x33f   : > { %v1552_v15 = vpop.xlane.xlu0 %1551 }
 0x340   : > { %v1737_v60 = vmul.bf16 1069105081, %v1700_v6  ;;  %v1740_v29 = vmul.bf16 1069105081, %v1701_v8  ;;  %v1642_v59 = vsub.f32 %v4618_v10, %v1552_v15  ;;  %v1643_v25 = vsub.f32 %v4620_v3, %v1552_v15 }
 0x341   : > { %v1555_v21 = vpop.xlane.xlu1 %1554 }
 0x342   : > { %3705 = vpow.bf16 %v1737_v60  ;;  %v1644_v49 = vsub.f32 %v4622_v9, %v1555_v21  ;;  %v1645_v38 = vsub.f32 %v4626_v2, %v1555_v21 }
 0x343   : > { %3707 = vpow.bf16 %v1740_v29 }
 0x344   : > { %v1702_v45 = vpack.c.bf16 %v1644_v49, %v1642_v59  ;;  %v1703_v20 = vpack.c.bf16 %v1645_v38, %v1643_v25 }
 0x345   : > { %v4798_v36 = vpop.eup %3701 }
 0x346   : > { %v4800_v1 = vpop.eup %3703  ;;  %v1743_v28 = vmul.bf16 1069105081, %v1702_v45  ;;  %v1746_v11 = vmul.bf16 1069105081, %v1703_v20  ;;  %v1826_v14 = vunpack.c.l.bf16 %v4798_v36  ;;  %v1828_v10 = vunpack.c.h.bf16 %v4798_v36 }
 0x347   : > { %v1558_v32 = vpop.xlane.xlu0 %1557  ;;  %v1827_v3 = vunpack.c.l.bf16 %v4800_v1  ;;  %v1829_v9 = vunpack.c.h.bf16 %v4800_v1 }
 0x348   : > { %3709 = vpow.bf16 %v1743_v28  ;;  %v1646_v46 = vsub.f32 %v4630_v23, %v1558_v32  ;;  %v1647_v58 = vsub.f32 %v4632_v35, %v1558_v32  ;;  %v5215_v35 = vmax.f32 %v4738_v52, %v4740_v43 }
 0x349   : > { %3711 = vpow.bf16 %v1746_v11  ;;  %v1561_v2 = vpop.xlane.xlu1 %1560  ;;  %v1890_v15 = vadd.f32 %v1827_v3, %v1826_v14  ;;  %v1893_v22 = vadd.f32 %v1829_v9, %v1828_v10 }
 0x34a   : > { %v1648_v13 = vsub.f32 %v4634_v37, %v1561_v2  ;;  %v1649_v12 = vsub.f32 %v4638_v24, %v1561_v2  ;;  %v5216_v37 = vmax.f32 %v4742_v31, %v4746_v42 }
 0x34b   : > { %1891 = vadd.xlane.f32.xlu0 %v1890_v15  ;;  %1894 = vadd.xlane.f32.xlu1 %v1893_v22 }
 0x34c   : > { %v1704_v6 = vpack.c.bf16 %v1648_v13, %v1646_v46  ;;  %v1705_v8 = vpack.c.bf16 %v1649_v12, %v1647_v58  ;;  %v5218_v13 = vmax.f32 %v4754_v33, %v4758_v16 }
 0x34d   : > { %v4810_v60 = vpop.eup %3705 }
 0x34e   : > { %v4812_v29 = vpop.eup %3707  ;;  %v1749_v59 = vmul.bf16 1069105081, %v1704_v6  ;;  %v1752_v21 = vmul.bf16 1069105081, %v1705_v8  ;;  %v1830_v25 = vunpack.c.l.bf16 %v4810_v60  ;;  %v1832_v23 = vunpack.c.h.bf16 %v4810_v60 }
 0x34f   : > { %1611 = vmax.xlane.f32.xlu0 %v5215_v35  ;;  %1614 = vmax.xlane.f32.xlu1 %v5216_v37  ;;  %v1564_v24 = vpop.xlane.xlu0 %1563  ;;  %v1831_v49 = vunpack.c.l.bf16 %v4812_v29  ;;  %v1833_v38 = vunpack.c.h.bf16 %v4812_v29 }
 0x350   : > { %3713 = vpow.bf16 %v1749_v59  ;;  %v1650_v11 = vsub.f32 %v4642_v41, %v1564_v24  ;;  %v1651_v14 = vsub.f32 %v4644_v39, %v1564_v24 }
 0x351   : > { %3715 = vpow.bf16 %v1752_v21  ;;  %v1567_v45 = vpop.xlane.xlu1 %1566  ;;  %v1896_v20 = vadd.f32 %v1831_v49, %v1830_v25  ;;  %v1899_v28 = vadd.f32 %v1833_v38, %v1832_v23 }
 0x352   : > { %v1652_v10 = vsub.f32 %v4646_v47, %v1567_v45  ;;  %v1653_v32 = vsub.f32 %v4650_v54, %v1567_v45  ;;  %v5217_v54 = vmax.f32 %v4750_v19, %v4752_v40 }
 0x353   : > { %v4828_v3 = vpop.eup %3709  ;;  %1897 = vadd.xlane.f32.xlu0 %v1896_v20  ;;  %1900 = vadd.xlane.f32.xlu1 %v1899_v28 }
 0x354   : > { %v4830_v9 = vpop.eup %3711  ;;  %v1706_v2 = vpack.c.bf16 %v1652_v10, %v1650_v11  ;;  %v1707_v15 = vpack.c.bf16 %v1653_v32, %v1651_v14  ;;  %v1834_v22 = vunpack.c.l.bf16 %v4828_v3  ;;  %v1836_v41 = vunpack.c.h.bf16 %v4828_v3 }
 0x355   : > { %v1835_v46 = vunpack.c.l.bf16 %v4830_v9  ;;  %v1837_v39 = vunpack.c.h.bf16 %v4830_v9  ;;  %v5220_v11 = vmax.f32 %v4766_v4, %v4770_v55 }
 0x356   : > { %v1755_v58 = vmul.bf16 1069105081, %v1706_v2  ;;  %v1758_v47 = vmul.bf16 1069105081, %v1707_v15 }
 0x357   : > { %1617 = vmax.xlane.f32.xlu0 %v5217_v54  ;;  %1620 = vmax.xlane.f32.xlu1 %v5218_v13  ;;  %v1570_v12 = vpop.xlane.xlu0 %1569  ;;  %v1902_v8 = vadd.f32 %v1835_v46, %v1834_v22  ;;  %v1905_v59 = vadd.f32 %v1837_v39, %v1836_v41 }
 0x358   : > { %3717 = vpow.bf16 %v1755_v58  ;;  %v1654_v21 = vsub.f32 %v4654_v50, %v1570_v12  ;;  %v1655_v25 = vsub.f32 %v4656_v26, %v1570_v12 }
 0x359   : > { %3719 = vpow.bf16 %v1758_v47  ;;  %v1573_v6 = vpop.xlane.xlu1 %1572 }
 0x35a   : > { %v1656_v23 = vsub.f32 %v4658_v27, %v1573_v6  ;;  %v1657_v35 = vsub.f32 %v4662_v18, %v1573_v6  ;;  %v5219_v18 = vmax.f32 %v4762_v30, %v4764_v34 }
 0x35b   : > { %v4846_v37 = vpop.eup %3713  ;;  %1903 = vadd.xlane.f32.xlu0 %v1902_v8  ;;  %1906 = vadd.xlane.f32.xlu1 %v1905_v59  ;;  %v5222_v8 = vmax.f32 %v4778_v63, %v4782_v5 }
 0x35c   : > { %v4848_v24 = vpop.eup %3715  ;;  %v1708_v49 = vpack.c.bf16 %v1656_v23, %v1654_v21  ;;  %v1709_v38 = vpack.c.bf16 %v1657_v35, %v1655_v25  ;;  %v1838_v45 = vunpack.c.l.bf16 %v4846_v37  ;;  %v1840_v50 = vunpack.c.h.bf16 %v4846_v37 }
 0x35d   : > { %v1839_v20 = vunpack.c.l.bf16 %v4848_v24  ;;  %v1841_v26 = vunpack.c.h.bf16 %v4848_v24 }
 0x35e   : > { %v1761_v28 = vmul.bf16 1069105081, %v1708_v49  ;;  %v1764_v27 = vmul.bf16 1069105081, %v1709_v38 }
 0x35f   : > { %1623 = vmax.xlane.f32.xlu0 %v5219_v18  ;;  %1626 = vmax.xlane.f32.xlu1 %v5220_v11  ;;  %v1576_v14 = vpop.xlane.xlu0 %1575  ;;  %v1908_v32 = vadd.f32 %v1839_v20, %v1838_v45  ;;  %v1911_v2 = vadd.f32 %v1841_v26, %v1840_v50 }
 0x360   : > { %3721 = vpow.bf16 %v1761_v28  ;;  %v1658_v15 = vsub.f32 %v4666_v51, %v1576_v14  ;;  %v1659_v22 = vsub.f32 %v4668_v61, %v1576_v14 }
 0x361   : > { %3723 = vpow.bf16 %v1764_v27  ;;  %v1579_v10 = vpop.xlane.xlu1 %1578 }
 0x362   : > { %v1660_v46 = vsub.f32 %v4670_v53, %v1579_v10  ;;  %v1661_v41 = vsub.f32 %v4674_v48, %v1579_v10  ;;  %v5221_v48 = vmax.f32 %v4774_v57, %v4776_v7 }
 0x363   : > { %v4864_v39 = vpop.eup %3717  ;;  %1909 = vadd.xlane.f32.xlu0 %v1908_v32  ;;  %1912 = vadd.xlane.f32.xlu1 %v1911_v2 }
 0x364   : > { %v4866_v58 = vpop.eup %3719  ;;  %v1710_v47 = vpack.c.bf16 %v1660_v46, %v1658_v15  ;;  %v1711_v54 = vpack.c.bf16 %v1661_v41, %v1659_v22  ;;  %v1842_v13 = vunpack.c.l.bf16 %v4864_v39  ;;  %v1844_v51 = vunpack.c.h.bf16 %v4864_v39  ;;  %v5223_v15 = vld [vmem:[#allocation14_spill] sm:$0xff]  ;;  %v5224_v46 = vld [vmem:[#allocation15_spill] sm:$0xff] }
 0x365   : > { %v1843_v12 = vunpack.c.l.bf16 %v4866_v58  ;;  %v1845_v61 = vunpack.c.h.bf16 %v4866_v58 }
 0x366   : > { %v1767_v6 = vmul.bf16 1069105081, %v1710_v47  ;;  %v1770_v53 = vmul.bf16 1069105081, %v1711_v54  ;;  %v5225_v47 = vld [vmem:[#allocation16_spill] sm:$0xff] }
 0x367   : > { %1629 = vmax.xlane.f32.xlu0 %v5221_v48  ;;  %1632 = vmax.xlane.f32.xlu1 %v5222_v8  ;;  %v1582_v59 = vpop.xlane.xlu0 %1581  ;;  %v1914_v25 = vadd.f32 %v1843_v12, %v1842_v13  ;;  %v1917_v23 = vadd.f32 %v1845_v61, %v1844_v51 }
 0x368   : > { %3725 = vpow.bf16 %v1767_v6  ;;  %v1662_v35 = vsub.f32 %v4678_v44, %v1582_v59  ;;  %v1663_v49 = vsub.f32 %v4680_v17, %v1582_v59 }
 0x369   : > { %3727 = vpow.bf16 %v1770_v53  ;;  %v1585_v21 = vpop.xlane.xlu1 %1584 }
 0x36a   : > { %v1664_v38 = vsub.f32 %v4682_v56, %v1585_v21  ;;  %v1665_v45 = vsub.f32 %v4686_v0, %v1585_v21 }
 0x36b   : > { %v4882_v20 = vpop.eup %3721  ;;  %1915 = vadd.xlane.f32.xlu0 %v1914_v25  ;;  %1918 = vadd.xlane.f32.xlu1 %v1917_v23 }
 0x36c   : > { %v4884_v50 = vpop.eup %3723  ;;  %v1712_v26 = vpack.c.bf16 %v1664_v38, %v1662_v35  ;;  %v1713_v28 = vpack.c.bf16 %v1665_v45, %v1663_v49  ;;  %v1846_v27 = vunpack.c.l.bf16 %v4882_v20  ;;  %v1848_v18 = vunpack.c.h.bf16 %v4882_v20  ;;  %v5226_v49 = vld [vmem:[#allocation17_spill] sm:$0xff]  ;;  %v5227_v45 = vld [vmem:[#allocation18_spill] sm:$0xff] }
 0x36d   : > { %v1847_v44 = vunpack.c.l.bf16 %v4884_v50  ;;  %v1849_v17 = vunpack.c.h.bf16 %v4884_v50 }
 0x36e   : > { %v1773_v11 = vmul.bf16 1069105081, %v1712_v26  ;;  %v1776_v56 = vmul.bf16 1069105081, %v1713_v28  ;;  %v5228_v28 = vld [vmem:[#allocation19_spill] sm:$0xff] }
 0x36f   : > { %v1588_v14 = vpop.xlane.xlu0 %1587  ;;  %v1920_v0 = vadd.f32 %v1847_v44, %v1846_v27  ;;  %v1923_v10 = vadd.f32 %v1849_v17, %v1848_v18  ;;  %v5229_v18 = vld [vmem:[#allocation20_spill] sm:$0xff] }
 0x370   : > { %3729 = vpow.bf16 %v1773_v11  ;;  %v1666_v2 = vsub.f32 %v4690_v62, %v1588_v14  ;;  %v1667_v22 = vsub.f32 %v5223_v15, %v1588_v14 }
 0x371   : > { %3731 = vpow.bf16 %v1776_v56  ;;  %1921 = vadd.xlane.f32.xlu0 %v1920_v0  ;;  %1924 = vadd.xlane.f32.xlu1 %v1923_v10  ;;  %v1591_v32 = vpop.xlane.xlu1 %1590 }
 0x372   : > { %v1668_v41 = vsub.f32 %v5224_v46, %v1591_v32  ;;  %v1669_v54 = vsub.f32 %v5225_v47, %v1591_v32 }
 0x373   : > { %v4894_v13 = vpop.eup %3725 }
 0x374   : > { %v4896_v12 = vpop.eup %3727  ;;  %v1714_v51 = vpack.c.bf16 %v1668_v41, %v1666_v2  ;;  %v1715_v61 = vpack.c.bf16 %v1669_v54, %v1667_v22  ;;  %v1850_v6 = vunpack.c.l.bf16 %v4894_v13  ;;  %v1852_v53 = vunpack.c.h.bf16 %v4894_v13 }
 0x375   : > { %v1851_v48 = vunpack.c.l.bf16 %v4896_v12  ;;  %v1853_v62 = vunpack.c.h.bf16 %v4896_v12 }
 0x376   : > { %v1779_v8 = vmul.bf16 1069105081, %v1714_v51  ;;  %v1782_v59 = vmul.bf16 1069105081, %v1715_v61  ;;  %v5230_v51 = vld [vmem:[#allocation21_spill] sm:$0xff] }
 0x377   : > { %v1594_v21 = vpop.xlane.xlu0 %1593  ;;  %v1926_v25 = vadd.f32 %v1851_v48, %v1850_v6  ;;  %v1929_v23 = vadd.f32 %v1853_v62, %v1852_v53  ;;  %v5231_v6 = vld [vmem:[#allocation22_spill] sm:$0xff]  ;;  %v5232_v48 = vld [vmem:[#allocation23_spill] sm:$0xff] }
 0x378   : > { %3733 = vpow.bf16 %v1779_v8  ;;  %v1670_v38 = vsub.f32 %v5226_v49, %v1594_v21  ;;  %v1671_v26 = vsub.f32 %v5227_v45, %v1594_v21  ;;  %v5233_v8 = vld [vmem:[#allocation24_spill] sm:$0xff] }
 0x379   : > { %3735 = vpow.bf16 %v1782_v59  ;;  %1927 = vadd.xlane.f32.xlu0 %v1926_v25  ;;  %1930 = vadd.xlane.f32.xlu1 %v1929_v23  ;;  %v1597_v35 = vpop.xlane.xlu1 %1596 }
 0x37a   : > { %v1672_v27 = vsub.f32 %v5228_v28, %v1597_v35  ;;  %v1673_v44 = vsub.f32 %v5229_v18, %v1597_v35 }
 0x37b   : > { %v4906_v17 = vpop.eup %3729 }
 0x37c   : > { %v4908_v11 = vpop.eup %3731  ;;  %v1716_v56 = vpack.c.bf16 %v1672_v27, %v1670_v38  ;;  %v1717_v14 = vpack.c.bf16 %v1673_v44, %v1671_v26  ;;  %v1854_v0 = vunpack.c.l.bf16 %v4906_v17  ;;  %v1856_v10 = vunpack.c.h.bf16 %v4906_v17 }
 0x37d   : > { %v1855_v32 = vunpack.c.l.bf16 %v4908_v11  ;;  %v1857_v2 = vunpack.c.h.bf16 %v4908_v11 }
 0x37e   : > { %v1785_v15 = vmul.bf16 1069105081, %v1716_v56  ;;  %v1788_v22 = vmul.bf16 1069105081, %v1717_v14 }
 0x37f   : > { %v1600_v46 = vpop.xlane.xlu0 %1599  ;;  %v1932_v41 = vadd.f32 %v1855_v32, %v1854_v0  ;;  %v1935_v47 = vadd.f32 %v1857_v2, %v1856_v10  ;;  %v5234_v0 = vld [vmem:[#allocation25_spill] sm:$0xff]  ;;  %v5235_v32 = vld [vmem:[#allocation26_spill] sm:$0xff] }
 0x380   : > { %3737 = vpow.bf16 %v1785_v15  ;;  %v1674_v61 = vsub.f32 %v5230_v51, %v1600_v46  ;;  %v1675_v53 = vsub.f32 %v5231_v6, %v1600_v46  ;;  %v5236_v15 = vld [vmem:[#allocation27_spill] sm:$0xff]  ;;  %v5237_v46 = vld [vmem:[#allocation28_spill] sm:$0xff] }
 0x381   : > { %3739 = vpow.bf16 %v1788_v22  ;;  %1933 = vadd.xlane.f32.xlu0 %v1932_v41  ;;  %1936 = vadd.xlane.f32.xlu1 %v1935_v47  ;;  %v1603_v54 = vpop.xlane.xlu1 %1602 }
 0x382   : > { %v1676_v62 = vsub.f32 %v5232_v48, %v1603_v54  ;;  %v1677_v59 = vsub.f32 %v5233_v8, %v1603_v54 }
 0x383   : > { %v4918_v21 = vpop.eup %3733 }
 0x384   : > { %v4920_v25 = vpop.eup %3735  ;;  %v1718_v23 = vpack.c.bf16 %v1676_v62, %v1674_v61  ;;  %v1719_v35 = vpack.c.bf16 %v1677_v59, %v1675_v53  ;;  %v1858_v49 = vunpack.c.l.bf16 %v4918_v21  ;;  %v1860_v38 = vunpack.c.h.bf16 %v4918_v21 }
 0x385   : > { %v1859_v45 = vunpack.c.l.bf16 %v4920_v25  ;;  %v1861_v26 = vunpack.c.h.bf16 %v4920_v25 }
 0x386   : > { %v1791_v28 = vmul.bf16 1069105081, %v1718_v23  ;;  %v1794_v27 = vmul.bf16 1069105081, %v1719_v35 }
 0x387   : > { %v1606_v18 = vpop.xlane.xlu0 %1605  ;;  %v1938_v44 = vadd.f32 %v1859_v45, %v1858_v49  ;;  %v1941_v56 = vadd.f32 %v1861_v26, %v1860_v38 }
 0x388   : > { %3741 = vpow.bf16 %v1791_v28  ;;  %v1678_v10 = vsub.f32 %v5234_v0, %v1606_v18  ;;  %v1679_v2 = vsub.f32 %v5235_v32, %v1606_v18 }
 0x389   : > { %3743 = vpow.bf16 %v1794_v27  ;;  %1939 = vadd.xlane.f32.xlu0 %v1938_v44  ;;  %1942 = vadd.xlane.f32.xlu1 %v1941_v56  ;;  %v1609_v14 = vpop.xlane.xlu1 %1608 }
 0x38a   : > { %v1680_v22 = vsub.f32 %v5236_v15, %v1609_v14  ;;  %v1681_v41 = vsub.f32 %v5237_v46, %v1609_v14 }
 0x38b   : > { %v4930_v47 = vpop.eup %3737 }
 0x38c   : > { %v4932_v54 = vpop.eup %3739  ;;  %v1720_v51 = vpack.c.bf16 %v1680_v22, %v1678_v10  ;;  %v1721_v61 = vpack.c.bf16 %v1681_v41, %v1679_v2  ;;  %v1862_v6 = vunpack.c.l.bf16 %v4930_v47  ;;  %v1864_v53 = vunpack.c.h.bf16 %v4930_v47 }
 0x38d   : > { %v1863_v48 = vunpack.c.l.bf16 %v4932_v54  ;;  %v1865_v62 = vunpack.c.h.bf16 %v4932_v54 }
 0x38e   : > { %v1797_v8 = vmul.bf16 1069105081, %v1720_v51  ;;  %v1800_v59 = vmul.bf16 1069105081, %v1721_v61 }
 0x38f   : > { %v1944_v23 = vadd.f32 %v1863_v48, %v1862_v6  ;;  %v1947_v35 = vadd.f32 %v1865_v62, %v1864_v53 }
 0x390   : > { %3745 = vpow.bf16 %v1797_v8 }
 0x391   : > { %3747 = vpow.bf16 %v1800_v59  ;;  %1945 = vadd.xlane.f32.xlu0 %v1944_v23  ;;  %1948 = vadd.xlane.f32.xlu1 %v1947_v35 }
 0x393   : > { %v4938_v49 = vpop.eup %3741 }
 0x394   : > { %v4940_v38 = vpop.eup %3743  ;;  %v1866_v45 = vunpack.c.l.bf16 %v4938_v49  ;;  %v1868_v26 = vunpack.c.h.bf16 %v4938_v49 }
 0x395   : > { %v1867_v28 = vunpack.c.l.bf16 %v4940_v38  ;;  %v1869_v27 = vunpack.c.h.bf16 %v4940_v38 }
 0x397   : > { %v1950_v18 = vadd.f32 %v1867_v28, %v1866_v45  ;;  %v1953_v44 = vadd.f32 %v1869_v27, %v1868_v26 }
 0x399   : > { %1951 = vadd.xlane.f32.xlu0 %v1950_v18  ;;  %1954 = vadd.xlane.f32.xlu1 %v1953_v44 }
 0x39b   : > { %v4946_v56 = vpop.eup %3745 }
 0x39c   : > { %v4948_v14 = vpop.eup %3747  ;;  %v1870_v0 = vunpack.c.l.bf16 %v4946_v56  ;;  %v1872_v10 = vunpack.c.h.bf16 %v4946_v56 }
 0x39d   : > { %v1871_v32 = vunpack.c.l.bf16 %v4948_v14  ;;  %v1873_v2 = vunpack.c.h.bf16 %v4948_v14 }
 0x39f   : > { %v1956_v15 = vadd.f32 %v1871_v32, %v1870_v0  ;;  %v1959_v22 = vadd.f32 %v1873_v2, %v1872_v10 }
 0x3a1   : > { %1957 = vadd.xlane.f32.xlu0 %v1956_v15  ;;  %1960 = vadd.xlane.f32.xlu1 %v1959_v22 }
 0x3d8   : > { %v1892_v46 = vpop.xlane.xlu0 %1891  ;;  %v1895_v41 = vpop.xlane.xlu1 %1894 }
 0x3d9   : > { %3749 = vrcp.f32 %v1892_v46 }
 0x3da   : > { %3751 = vrcp.f32 %v1895_v41 }
 0x3dc   : > { %v1612_v51 = vpop.xlane.xlu0 %1611  ;;  %v1615_v61 = vpop.xlane.xlu1 %1614 }
 0x3dd   : > { %v1682_v6 = vsub.f32 %v4738_v52, %v1612_v51  ;;  %v1683_v53 = vsub.f32 %v4740_v43, %v1612_v51  ;;  %v1684_v48 = vsub.f32 %v4742_v31, %v1615_v61  ;;  %v1685_v62 = vsub.f32 %v4746_v42, %v1615_v61 }
 0x3df   : > { %v1722_v8 = vpack.c.bf16 %v1684_v48, %v1682_v6  ;;  %v1723_v59 = vpack.c.bf16 %v1685_v62, %v1683_v53 }
 0x3e0   : > { %v1898_v23 = vpop.xlane.xlu0 %1897  ;;  %v1901_v35 = vpop.xlane.xlu1 %1900 }
 0x3e1   : > { %v1803_v45 = vmul.bf16 1069105081, %v1722_v8  ;;  %v1806_v26 = vmul.bf16 1069105081, %v1723_v59  ;;  %3753 = vrcp.f32 %v1898_v23 }
 0x3e2   : > { %3755 = vrcp.f32 %v1901_v35 }
 0x3e3   : > { %v3750_v28 = vpop.eup %3749  ;;  %3757 = vpow.bf16 %v1803_v45 }
 0x3e4   : > { %v3752_v27 = vpop.eup %3751  ;;  %3759 = vpow.bf16 %v1806_v26  ;;  %v1618_v18 = vpop.xlane.xlu0 %1617 }
 0x3e5   : > { %v1621_v52 = vpop.xlane.xlu1 %1620  ;;  %v1686_v43 = vsub.f32 %v4750_v19, %v1618_v18  ;;  %v1687_v31 = vsub.f32 %v4752_v40, %v1618_v18  ;;  %v2018_v0 = vpack.c.bf16 %v3752_v27, %v3750_v28 }
 0x3e6   : > { %v1688_v42 = vsub.f32 %v4754_v33, %v1621_v52  ;;  %v1689_v44 = vsub.f32 %v4758_v16, %v1621_v52 }
 0x3e7   : > { %v2034_v2 = vmul.bf16 %v4798_v36, %v2018_v0  ;;  %v2035_v15 = vmul.bf16 %v4800_v1, %v2018_v0 }
 0x3e8   : > { %v1724_v10 = vpack.c.bf16 %v1688_v42, %v1686_v43  ;;  %v1725_v32 = vpack.c.bf16 %v1689_v44, %v1687_v31  ;;  %v1904_v22 = vpop.xlane.xlu0 %1903 }
 0x3e9   : > { %v1907_v46 = vpop.xlane.xlu1 %1906  ;;  %3761 = vrcp.f32 %v1904_v22  ;;  %2114 = vmatprep.mubr.bf16.mxu0 %v2035_v15 }
 0x3ea   : > { %v1809_v41 = vmul.bf16 1069105081, %v1724_v10  ;;  %v1812_v51 = vmul.bf16 1069105081, %v1725_v32  ;;  %3763 = vrcp.f32 %v1907_v46  ;;  %2115 = vmatmul.mubr.bf16.vlgmr.msra.gmra.mrb[64].mxu0 %v2034_v2 }
 0x3eb   : > { %v3754_v19 = vpop.eup %3753 }
 0x3ec   : > { %3765 = vpow.bf16 %v1809_v41  ;;  %v3756_v40 = vpop.eup %3755  ;;  %v1624_v33 = vpop.xlane.xlu0 %1623 }
 0x3ed   : > { %3767 = vpow.bf16 %v1812_v51  ;;  %v1627_v16 = vpop.xlane.xlu1 %1626  ;;  %v1690_v61 = vsub.f32 %v4762_v30, %v1624_v33  ;;  %v1691_v36 = vsub.f32 %v4764_v34, %v1624_v33  ;;  %v2019_v48 = vpack.c.bf16 %v3756_v40, %v3754_v19 }
 0x3ee   : > { %v1692_v1 = vsub.f32 %v4766_v4, %v1627_v16  ;;  %v1693_v6 = vsub.f32 %v4770_v55, %v1627_v16  ;;  %v4968_v53 = vpop.eup %3757 }
 0x3ef   : > { %v4970_v62 = vpop.eup %3759  ;;  %v1874_v23 = vunpack.c.l.bf16 %v4968_v53  ;;  %v1876_v35 = vunpack.c.h.bf16 %v4968_v53  ;;  %v2037_v45 = vmul.bf16 %v4812_v29, %v2019_v48  ;;  %v2036_v34 = vmul.bf16 %v4810_v60, %v2019_v48 }
 0x3f0   : > { %v1726_v8 = vpack.c.bf16 %v1692_v1, %v1690_v61  ;;  %v1727_v59 = vpack.c.bf16 %v1693_v6, %v1691_v36  ;;  %v1910_v30 = vpop.xlane.xlu0 %1909  ;;  %v1875_v4 = vunpack.c.l.bf16 %v4970_v62  ;;  %v1877_v55 = vunpack.c.h.bf16 %v4970_v62 }
 0x3f1   : > { %v1913_v26 = vpop.xlane.xlu1 %1912  ;;  %3769 = vrcp.f32 %v1910_v30  ;;  %2122 = vmatprep.mubr.bf16.mxu0 %v2037_v45 }
 0x3f2   : > { %v1815_v28 = vmul.bf16 1069105081, %v1726_v8  ;;  %v1818_v27 = vmul.bf16 1069105081, %v1727_v59  ;;  %3771 = vrcp.f32 %v1913_v26  ;;  %v1962_v18 = vadd.f32 %v1875_v4, %v1874_v23  ;;  %2123 = vmatmul.mubr.bf16.gmra.mrb[68].mxu0 %v2036_v34 }
 0x3f3   : > { %v1965_v52 = vadd.f32 %v1877_v55, %v1876_v35  ;;  %v3762_v43 = vpop.eup %3761 }
 0x3f4   : > { %3773 = vpow.bf16 %v1815_v28  ;;  %v3764_v31 = vpop.eup %3763  ;;  %1963 = vadd.xlane.f32.xlu0 %v1962_v18  ;;  %v1630_v29 = vpop.xlane.xlu0 %1629 }
 0x3f5   : > { %3775 = vpow.bf16 %v1818_v27  ;;  %1966 = vadd.xlane.f32.xlu1 %v1965_v52  ;;  %v1633_v60 = vpop.xlane.xlu1 %1632  ;;  %v1694_v42 = vsub.f32 %v4774_v57, %v1630_v29  ;;  %v1695_v44 = vsub.f32 %v4776_v7, %v1630_v29  ;;  %v2020_v2 = vpack.c.bf16 %v3764_v31, %v3762_v43 }
 0x3f6   : > { %v1696_v0 = vsub.f32 %v4778_v63, %v1633_v60  ;;  %v1697_v10 = vsub.f32 %v4782_v5, %v1633_v60 }
 0x3f7   : > { %v4982_v32 = vpop.eup %3765  ;;  %v2039_v19 = vmul.bf16 %v4830_v9, %v2020_v2  ;;  %v2038_v7 = vmul.bf16 %v4828_v3, %v2020_v2 }
 0x3f8   : > { %v4984_v15 = vpop.eup %3767  ;;  %v1728_v22 = vpack.c.bf16 %v1696_v0, %v1694_v42  ;;  %v1729_v46 = vpack.c.bf16 %v1697_v10, %v1695_v44  ;;  %v1878_v41 = vunpack.c.l.bf16 %v4982_v32  ;;  %v1880_v51 = vunpack.c.h.bf16 %v4982_v32  ;;  %v1916_v57 = vpop.xlane.xlu0 %1915 }
 0x3f9   : > { %v1919_v40 = vpop.xlane.xlu1 %1918  ;;  %v1879_v63 = vunpack.c.l.bf16 %v4984_v15  ;;  %v1881_v5 = vunpack.c.h.bf16 %v4984_v15  ;;  %3777 = vrcp.f32 %v1916_v57  ;;  %2130 = vmatprep.mubr.bf16.mxu0 %v2039_v19 }
 0x3fa   : > { %v1821_v33 = vmul.bf16 1069105081, %v1728_v22  ;;  %v1824_v16 = vmul.bf16 1069105081, %v1729_v46  ;;  %3779 = vrcp.f32 %v1919_v40  ;;  %2131 = vmatmul.mubr.bf16.gmra.mrb[72].mxu0 %v2038_v7 }
 0x3fb   : > { %v1968_v61 = vadd.f32 %v1879_v63, %v1878_v41  ;;  %v1971_v36 = vadd.f32 %v1881_v5, %v1880_v51  ;;  %v3770_v1 = vpop.eup %3769 }
 0x3fc   : > { %3781 = vpow.bf16 %v1821_v33  ;;  %v3772_v6 = vpop.eup %3771 }
 0x3fd   : > { %3783 = vpow.bf16 %v1824_v16  ;;  %1969 = vadd.xlane.f32.xlu0 %v1968_v61  ;;  %1972 = vadd.xlane.f32.xlu1 %v1971_v36  ;;  %v2021_v9 = vpack.c.bf16 %v3772_v6, %v3770_v1 }
 0x3fe   : > { %v1922_v48 = vpop.xlane.xlu0 %1921  ;;  %v1925_v8 = vpop.xlane.xlu1 %1924 }
 0x3ff   : > { %v4992_v3 = vpop.eup %3773  ;;  %3785 = vrcp.f32 %v1922_v48  ;;  %v2041_v23 = vmul.bf16 %v4848_v24, %v2021_v9  ;;  %v2040_v35 = vmul.bf16 %v4846_v37, %v2021_v9 }
 0x400   : > { %v4994_v59 = vpop.eup %3775  ;;  %v1882_v45 = vunpack.c.l.bf16 %v4992_v3  ;;  %3787 = vrcp.f32 %v1925_v8  ;;  %v1884_v26 = vunpack.c.h.bf16 %v4992_v3 }
 0x401   : > { %v1883_v30 = vunpack.c.l.bf16 %v4994_v59  ;;  %v1885_v34 = vunpack.c.h.bf16 %v4994_v59  ;;  %2138 = vmatprep.mubr.bf16.mxu0 %v2041_v23 }
 0x402   : > { %2139 = vmatmul.mubr.bf16.gmra.mrb[76].mxu0 %v2040_v35 }
 0x403   : > { %v1974_v4 = vadd.f32 %v1883_v30, %v1882_v45  ;;  %v1977_v55 = vadd.f32 %v1885_v34, %v1884_v26  ;;  %v3778_v28 = vpop.eup %3777  ;;  %v3677_v34 = vld [vmem:[#allocation9] sm:$0xff]  }
 0x404   : > { %v3780_v27 = vpop.eup %3779  ;;  %3484 = vmatprep.subr.bf16.mxu1 %v3677_v34 }
 0x405   : > { %1975 = vadd.xlane.f32.xlu0 %v1974_v4  ;;  %1978 = vadd.xlane.f32.xlu1 %v1977_v55  ;;  %v2022_v24 = vpack.c.bf16 %v3780_v27, %v3778_v28  ;;  %v3678_v4 = vld [vmem:[#allocation9 + $0x8] sm:$0xff]  }
 0x406   : > { %v1928_v37 = vpop.xlane.xlu0 %1927  ;;  %v1931_v52 = vpop.xlane.xlu1 %1930  ;;  %3485 = vmatpush3.bf16.msra.mxu1 %v3677_v34 }
 0x407   : > { %v5002_v18 = vpop.eup %3781  ;;  %3789 = vrcp.f32 %v1928_v37  ;;  %v2043_v31 = vmul.bf16 %v4866_v58, %v2022_v24  ;;  %v2042_v29 = vmul.bf16 %v4864_v39, %v2022_v24  ;;  %3486 = vmatprep.subr.bf16.mxu1 %v3678_v4 }
 0x408   : > { %v5004_v43 = vpop.eup %3783  ;;  %v1888_v60 = vunpack.c.h.bf16 %v5002_v18  ;;  %3791 = vrcp.f32 %v1931_v52  ;;  %v1886_v44 = vunpack.c.l.bf16 %v5002_v18  ;;  %v3680_v52 = vld [vmem:[#allocation9 + $0x18] sm:$0xff]  }
 0x409   : > { %v1889_v42 = vunpack.c.h.bf16 %v5004_v43  ;;  %v1887_v0 = vunpack.c.l.bf16 %v5004_v43  ;;  %v3786_v10 = vpop.eup %3785  ;;  %2146 = vmatprep.mubr.bf16.mxu0 %v2043_v31 }
 0x40a   : > { %v3788_v2 = vpop.eup %3787  ;;  %2147 = vmatmul.mubr.bf16.gmra.mrb[80].mxu0 %v2042_v29  ;;  %3487 = vmatpush3.bf16.msra.mxu1 %v3678_v4 }
 0x40b   : > { %v1983_v22 = vadd.f32 %v1889_v42, %v1888_v60  ;;  %v1980_v46 = vadd.f32 %v1887_v0, %v1886_v44  ;;  %v2023_v41 = vpack.c.bf16 %v3788_v2, %v3786_v10  ;;  %v3681_v44 = vld [vmem:[#allocation9 + $0x20] sm:$0xff]   ;;  %v3682_v0 = vld [vmem:[#allocation9 + $0x28] sm:$0xff]  }
 0x40d   : > { %1984 = vadd.xlane.f32.xlu1 %v1983_v22  ;;  %1981 = vadd.xlane.f32.xlu0 %v1980_v46  ;;  %v2045_v39 = vmul.bf16 %v4884_v50, %v2023_v41  ;;  %v2044_v57 = vmul.bf16 %v4882_v20, %v2023_v41 }
 0x40e   : > { %v1934_v58 = vpop.xlane.xlu0 %1933  ;;  %v1937_v51 = vpop.xlane.xlu1 %1936 }
 0x40f   : > { %3793 = vrcp.f32 %v1934_v58  ;;  %2154 = vmatprep.mubr.bf16.mxu0 %v2045_v39 }
 0x410   : > { %3795 = vrcp.f32 %v1937_v51 }
 0x411   : > { %v3790_v19 = vpop.eup %3789 }
 0x412   : > { %v3792_v40 = vpop.eup %3791  ;;  %2155 = vmatmul.mubr.bf16.gmra.mrb[84].mxu0 %v2044_v57 }
 0x413   : > { %v2024_v7 = vpack.c.bf16 %v3792_v40, %v3790_v19 }
 0x415   : > { %v2047_v63 = vmul.bf16 %v4896_v12, %v2024_v7  ;;  %v2046_v50 = vmul.bf16 %v4894_v13, %v2024_v7 }
 0x416   : > { %v1940_v5 = vpop.xlane.xlu0 %1939  ;;  %v1943_v33 = vpop.xlane.xlu1 %1942 }
 0x417   : > { %3797 = vrcp.f32 %v1940_v5  ;;  %2162 = vmatprep.mubr.bf16.mxu0 %v2047_v63 }
 0x418   : > { %3799 = vrcp.f32 %v1943_v33 }
 0x419   : > { %v3794_v16 = vpop.eup %3793 }
 0x41a   : > { %v3796_v61 = vpop.eup %3795  ;;  %2163 = vmatmul.mubr.bf16.gmra.mrb[88].mxu0 %v2046_v50 }
 0x41b   : > { %v2025_v36 = vpack.c.bf16 %v3796_v61, %v3794_v16 }
 0x41d   : > { %v2049_v1 = vmul.bf16 %v4908_v11, %v2025_v36  ;;  %v2048_v12 = vmul.bf16 %v4906_v17, %v2025_v36 }
 0x41e   : > { %v1946_v6 = vpop.xlane.xlu0 %1945  ;;  %v1949_v20 = vpop.xlane.xlu1 %1948 }
 0x41f   : > { %3801 = vrcp.f32 %v1946_v6  ;;  %2170 = vmatprep.mubr.bf16.mxu0 %v2049_v1 }
 0x420   : > { %3803 = vrcp.f32 %v1949_v20 }
 0x421   : > { %v3798_v9 = vpop.eup %3797 }
 0x422   : > { %v3800_v48 = vpop.eup %3799  ;;  %2171 = vmatmul.mubr.bf16.gmra.mrb[92].mxu0 %v2048_v12 }
 0x423   : > { %v2026_v8 = vpack.c.bf16 %v3800_v48, %v3798_v9 }
 0x425   : > { %v2051_v23 = vmul.bf16 %v4920_v25, %v2026_v8  ;;  %v2050_v11 = vmul.bf16 %v4918_v21, %v2026_v8  ;;  %v3679_v25 = vld [vmem:[#allocation9 + $0x10] sm:$0xff]  }
 0x426   : > { %v1952_v35 = vpop.xlane.xlu0 %1951  ;;  %v1955_v13 = vpop.xlane.xlu1 %1954  ;;  %3488 = vmatprep.subr.bf16.mxu1 %v3679_v25 }
 0x427   : > { %3805 = vrcp.f32 %v1952_v35  ;;  %2178 = vmatprep.mubr.bf16.mxu0 %v2051_v23  ;;  %3489 = vmatpush3.bf16.msra.mxu1 %v3679_v25 }
 0x428   : > { %3807 = vrcp.f32 %v1955_v13  ;;  %3490 = vmatprep.subr.bf16.mxu1 %v3680_v52 }
 0x429   : > { %v3802_v45 = vpop.eup %3801 }
 0x42a   : > { %v3804_v30 = vpop.eup %3803  ;;  %2179 = vmatmul.mubr.bf16.gmra.mrb[96].mxu0 %v2050_v11 }
 0x42b   : > { %v2027_v26 = vpack.c.bf16 %v3804_v30, %v3802_v45  ;;  %3491 = vmatpush3.bf16.msra.mxu1 %v3680_v52 }
 0x42c   : > { %3492 = vmatprep.subr.bf16.mxu1 %v3681_v44 }
 0x42d   : > { %v2053_v17 = vmul.bf16 %v4932_v54, %v2027_v26  ;;  %v2052_v24 = vmul.bf16 %v4930_v47, %v2027_v26 }
 0x42e   : > { %v1958_v55 = vpop.xlane.xlu0 %1957  ;;  %v1961_v28 = vpop.xlane.xlu1 %1960 }
 0x42f   : > { %3809 = vrcp.f32 %v1958_v55  ;;  %2186 = vmatprep.mubr.bf16.mxu0 %v2053_v17  ;;  %3493 = vmatpush3.bf16.msra.mxu1 %v3681_v44 }
 0x430   : > { %3811 = vrcp.f32 %v1961_v28  ;;  %3494 = vmatprep.subr.bf16.mxu1 %v3682_v0 }
 0x431   : > { %v3806_v27 = vpop.eup %3805 }
 0x432   : > { %v3808_v21 = vpop.eup %3807  ;;  %2187 = vmatmul.mubr.bf16.gmra.mrb[100].mxu0 %v2052_v24 }
 0x433   : > { %v2028_v37 = vpack.c.bf16 %v3808_v21, %v3806_v27  ;;  %3495 = vmatpush3.bf16.msra.mxu1 %v3682_v0 }
 0x435   : > { %v2055_v54 = vmul.bf16 %v4940_v38, %v2028_v37  ;;  %v2054_v29 = vmul.bf16 %v4938_v49, %v2028_v37  ;;  %v3683_v38 = vld [vmem:[#allocation9 + $0x30] sm:$0xff]   ;;  %v3684_v49 = vld [vmem:[#allocation9 + $0x38] sm:$0xff]  }
 0x436   : > { %3496 = vmatprep.subr.bf16.mxu1 %v3683_v38 }
 0x437   : > { %2194 = vmatprep.mubr.bf16.mxu0 %v2055_v54  ;;  %3497 = vmatpush3.bf16.msra.mxu1 %v3683_v38 }
 0x438   : > { %3498 = vmatprep.subr.bf16.mxu1 %v3684_v49 }
 0x439   : > { %v3810_v31 = vpop.eup %3809 }
 0x43a   : > { %v3812_v60 = vpop.eup %3811  ;;  %2195 = vmatmul.mubr.bf16.gmra.mrb[104].mxu0 %v2054_v29 }
 0x43b   : > { %v2029_v42 = vpack.c.bf16 %v3812_v60, %v3810_v31  ;;  %3499 = vmatpush3.bf16.msra.mxu1 %v3684_v49 }
 0x43d   : > { %v2057_v47 = vmul.bf16 %v4948_v14, %v2029_v42  ;;  %v2056_v10 = vmul.bf16 %v4946_v56, %v2029_v42 }
 0x43f   : > { %2202 = vmatprep.mubr.bf16.mxu0 %v2057_v47 }
 0x442   : > { %2203 = vmatmul.mubr.bf16.gmra.mrb[108].mxu0 %v2056_v10 }
 0x481   : > { %v1964_v2 = vpop.xlane.xlu0 %1963 }
 0x482   : > { %v1967_v22 = vpop.xlane.xlu1 %1966  ;;  %3813 = vrcp.f32 %v1964_v2 }
 0x483   : > { %3815 = vrcp.f32 %v1967_v22 }
 0x48a   : > { %v1970_v14 = vpop.xlane.xlu0 %1969  ;;  %v1973_v46 = vpop.xlane.xlu1 %1972 }
 0x48b   : > { %3817 = vrcp.f32 %v1970_v14 }
 0x48c   : > { %3819 = vrcp.f32 %v1973_v46  ;;  %v3814_v41 = vpop.eup %3813 }
 0x48d   : > { %v3816_v39 = vpop.eup %3815 }
 0x48e   : > { %v2030_v56 = vpack.c.bf16 %v3816_v39, %v3814_v41 }
 0x490   : > { %v2059_v58 = vmul.bf16 %v4970_v62, %v2030_v56  ;;  %v2058_v51 = vmul.bf16 %v4968_v53, %v2030_v56 }
 0x492   : > { %v1976_v19 = vpop.xlane.xlu0 %1975  ;;  %v1979_v57 = vpop.xlane.xlu1 %1978  ;;  %2210 = vmatprep.mubr.bf16.mxu0 %v2059_v58 }
 0x493   : > { %3821 = vrcp.f32 %v1976_v19  ;;  %2211 = vmatmul.mubr.bf16.gmra.mrb[112].mxu0 %v2058_v51 }
 0x494   : > { %3823 = vrcp.f32 %v1979_v57 }
 0x495   : > { %v3818_v40 = vpop.eup %3817 }
 0x496   : > { %v3820_v7 = vpop.eup %3819 }
 0x497   : > { %v2031_v63 = vpack.c.bf16 %v3820_v7, %v3818_v40 }
 0x499   : > { %v2061_v5 = vmul.bf16 %v4984_v15, %v2031_v63  ;;  %v2060_v33 = vmul.bf16 %v4982_v32, %v2031_v63 }
 0x49a   : > { %v1982_v16 = vpop.xlane.xlu0 %1981  ;;  %v1985_v50 = vpop.xlane.xlu1 %1984 }
 0x49b   : > { %3825 = vrcp.f32 %v1982_v16  ;;  %2218 = vmatprep.mubr.bf16.mxu0 %v2061_v5 }
 0x49c   : > { %3827 = vrcp.f32 %v1985_v50  ;;  %2219 = vmatmul.mubr.bf16.gmra.mrb[116].mxu0 %v2060_v33 }
 0x49d   : > { %v3822_v53 = vpop.eup %3821 }
 0x49e   : > { %v3824_v62 = vpop.eup %3823 }
 0x49f   : > { %v2032_v61 = vpack.c.bf16 %v3824_v62, %v3822_v53 }
 0x4a1   : > { %v2063_v36 = vmul.bf16 %v4994_v59, %v2032_v61  ;;  %v2062_v1 = vmul.bf16 %v4992_v3, %v2032_v61 }
 0x4a3   : > { %2226 = vmatprep.mubr.bf16.mxu0 %v2063_v36 }
 0x4a4   : > { %2227 = vmatmul.mubr.bf16.gmra.mrb[120].mxu0 %v2062_v1 }
 0x4a5   : > { %v3826_v6 = vpop.eup %3825 }
 0x4a6   : > { %v3828_v20 = vpop.eup %3827 }
 0x4a7   : > { %v2033_v15 = vpack.c.bf16 %v3828_v20, %v3826_v6 }
 0x4a9   : > { %v2065_v32 = vmul.bf16 %v5004_v43, %v2033_v15  ;;  %v2064_v9 = vmul.bf16 %v5002_v18, %v2033_v15 }
 0x4ab   : > { %2234 = vmatprep.mubr.bf16.mxu0 %v2065_v32 }
 0x4ac   : > { %2235 = vmatmul.mubr.bf16.gmra.mrb[124].mxu0 %v2064_v9 }
 0x4bd   : > { %v3220_v12 = vpop.f32.mrb[64].mxu0 }
 0x4be   : > { %v3221_v48 = vpop.f32.mrb[65].mxu0 }
 0x4bf   : > { %v3222_v8 = vadd.f32 %v3221_v48, %v3220_v12  ;;  %v3223_v23 = vpop.f32.mrb[66].mxu0 }
 0x4c0   : > { %v3224_v35 = vpop.f32.mrb[67].mxu0 }
 0x4c1   : > { %v3225_v13 = vadd.f32 %v3224_v35, %v3223_v23 }
 0x4c3   : > { %v2243_v59 = vpack.c.bf16 %v3225_v13, %v3222_v8 }
 0x4c5   : > { %v3226_v45 = vpop.f32.mrb[68].mxu0  ;;  %3500 = vmatprep.mubr.bf16.mxu1 %v2243_v59 }
 0x4c6   : > { %v3227_v3 = vpop.f32.mrb[69].mxu0 }
 0x4c7   : > { %v3228_v11 = vadd.f32 %v3227_v3, %v3226_v45  ;;  %v3229_v30 = vpop.f32.mrb[70].mxu0 }
 0x4c8   : > { %v3230_v26 = vpop.f32.mrb[71].mxu0 }
 0x4c9   : > { %v3231_v34 = vadd.f32 %v3230_v26, %v3229_v30 }
 0x4cb   : > { %v2244_v4 = vpack.c.bf16 %v3231_v34, %v3228_v11 }
 0x4cd   : > { %v3232_v43 = vpop.f32.mrb[72].mxu0  ;;  %3501 = vmatmul.mubr.bf16.vlgmr.msra.gmra.mrb[96].mxu1 %v2244_v4 }
 0x4ce   : > { %v3233_v18 = vpop.f32.mrb[73].mxu0 }
 0x4cf   : > { %v3234_v17 = vadd.f32 %v3233_v18, %v3232_v43  ;;  %v3235_v55 = vpop.f32.mrb[74].mxu0 }
 0x4d0   : > { %v3236_v28 = vpop.f32.mrb[75].mxu0 }
 0x4d1   : > { %v3237_v25 = vadd.f32 %v3236_v28, %v3235_v55 }
 0x4d3   : > { %v2245_v27 = vpack.c.bf16 %v3237_v25, %v3234_v17 }
 0x4d5   : > { %v3238_v24 = vpop.f32.mrb[76].mxu0  ;;  %3504 = vmatprep.mubr.bf16.mxu1 %v2245_v27 }
 0x4d6   : > { %v3239_v21 = vpop.f32.mrb[77].mxu0 }
 0x4d7   : > { %v3240_v37 = vadd.f32 %v3239_v21, %v3238_v24  ;;  %v3241_v52 = vpop.f32.mrb[78].mxu0 }
 0x4d8   : > { %v3242_v54 = vpop.f32.mrb[79].mxu0 }
 0x4d9   : > { %v3243_v31 = vadd.f32 %v3242_v54, %v3241_v52 }
 0x4db   : > { %v2246_v29 = vpack.c.bf16 %v3243_v31, %v3240_v37 }
 0x4dd   : > { %v3244_v60 = vpop.f32.mrb[80].mxu0  ;;  %3505 = vmatmul.mubr.bf16.gmra.mrb[100].mxu1 %v2246_v29 }
 0x4de   : > { %v3245_v42 = vpop.f32.mrb[81].mxu0 }
 0x4df   : > { %v3246_v44 = vadd.f32 %v3245_v42, %v3244_v60  ;;  %v3247_v47 = vpop.f32.mrb[82].mxu0 }
 0x4e0   : > { %v3248_v0 = vpop.f32.mrb[83].mxu0 }
 0x4e1   : > { %v3249_v10 = vadd.f32 %v3248_v0, %v3247_v47 }
 0x4e3   : > { %v2247_v38 = vpack.c.bf16 %v3249_v10, %v3246_v44 }
 0x4e5   : > { %v3250_v49 = vpop.f32.mrb[84].mxu0  ;;  %3508 = vmatprep.mubr.bf16.mxu1 %v2247_v38 }
 0x4e6   : > { %v3251_v2 = vpop.f32.mrb[85].mxu0 }
 0x4e7   : > { %v3252_v22 = vadd.f32 %v3251_v2, %v3250_v49  ;;  %v3253_v14 = vpop.f32.mrb[86].mxu0 }
 0x4e8   : > { %v3254_v46 = vpop.f32.mrb[87].mxu0 }
 0x4e9   : > { %v3255_v41 = vadd.f32 %v3254_v46, %v3253_v14 }
 0x4eb   : > { %v2248_v39 = vpack.c.bf16 %v3255_v41, %v3252_v22 }
 0x4ed   : > { %v3256_v56 = vpop.f32.mrb[88].mxu0  ;;  %3509 = vmatmul.mubr.bf16.gmra.mrb[104].mxu1 %v2248_v39 }
 0x4ee   : > { %v3257_v58 = vpop.f32.mrb[89].mxu0 }
 0x4ef   : > { %v3258_v51 = vadd.f32 %v3257_v58, %v3256_v56  ;;  %v3259_v19 = vpop.f32.mrb[90].mxu0 }
 0x4f0   : > { %v3260_v57 = vpop.f32.mrb[91].mxu0 }
 0x4f1   : > { %v3261_v40 = vadd.f32 %v3260_v57, %v3259_v19 }
 0x4f3   : > { %v2249_v7 = vpack.c.bf16 %v3261_v40, %v3258_v51 }
 0x4f5   : > { %v3262_v63 = vpop.f32.mrb[92].mxu0  ;;  %3512 = vmatprep.mubr.bf16.mxu1 %v2249_v7  ;;  %v5037_v7 = vld [vmem:[%s5167_s4] ss:$0 sm:$0xff] }
 0x4f6   : > { %v3263_v5 = vpop.f32.mrb[93].mxu0 }
 0x4f7   : > { %v3264_v33 = vadd.f32 %v3263_v5, %v3262_v63  ;;  %v3265_v16 = vpop.f32.mrb[94].mxu0 }
 0x4f8   : > { %v3266_v50 = vpop.f32.mrb[95].mxu0 }
 0x4f9   : > { %v3267_v53 = vadd.f32 %v3266_v50, %v3265_v16 }
 0x4fb   : > { %v2250_v62 = vpack.c.bf16 %v3267_v53, %v3264_v33  ;;  %v3829_v33 = vld [vmem:[%s4259_s25 + $0x8] sm:$0xff]  }
 0x4fc   : > { %v2493_v16 = vunpack.c.l.bf16 %v3829_v33  ;;  %v2494_v53 = vunpack.c.h.bf16 %v3829_v33 }
 0x4fd   : > { %v3268_v61 = vpop.f32.mrb[96].mxu0  ;;  %3513 = vmatmul.mubr.bf16.gmra.mrb[108].mxu1 %v2250_v62 }
 0x4fe   : > { %v3269_v36 = vpop.f32.mrb[97].mxu0 }
 0x4ff   : > { %v3270_v1 = vadd.f32 %v3269_v36, %v3268_v61  ;;  %v3271_v6 = vpop.f32.mrb[98].mxu0  ;;  %v3830_v61 = vld [vmem:[%s4259_s25] sm:$0xff]  }
 0x500   : > { %v3272_v20 = vpop.f32.mrb[99].mxu0  ;;  %v2491_v36 = vunpack.c.l.bf16 %v3830_v61 }
 0x501   : > { %v3273_v15 = vadd.f32 %v3272_v20, %v3271_v6  ;;  %v2492_v6 = vunpack.c.h.bf16 %v3830_v61 }
 0x503   : > { %v2251_v32 = vpack.c.bf16 %v3273_v15, %v3270_v1 }
 0x505   : > { %v3274_v9 = vpop.f32.mrb[100].mxu0  ;;  %3516 = vmatprep.mubr.bf16.mxu1 %v2251_v32 }
 0x506   : > { %v3275_v12 = vpop.f32.mrb[101].mxu0 }
 0x507   : > { %v3276_v48 = vadd.f32 %v3275_v12, %v3274_v9  ;;  %v3277_v8 = vpop.f32.mrb[102].mxu0 }
 0x508   : > { %v3278_v23 = vpop.f32.mrb[103].mxu0 }
 0x509   : > { %v3279_v35 = vadd.f32 %v3278_v23, %v3277_v8 }
 0x50b   : > { %v2252_v13 = vpack.c.bf16 %v3279_v35, %v3276_v48 }
 0x50d   : > { %v3280_v59 = vpop.f32.mrb[104].mxu0  ;;  %3517 = vmatmul.mubr.bf16.gmra.mrb[112].mxu1 %v2252_v13 }
 0x50e   : > { %v3281_v45 = vpop.f32.mrb[105].mxu0 }
 0x50f   : > { %v3282_v3 = vadd.f32 %v3281_v45, %v3280_v59  ;;  %v3283_v11 = vpop.f32.mrb[106].mxu0  ;;  %v3831_v45 = vld [vmem:[%s4259_s25 + $0x18] sm:$0xff]  }
 0x510   : > { %v3284_v30 = vpop.f32.mrb[107].mxu0 }
 0x511   : > { %v3285_v26 = vadd.f32 %v3284_v30, %v3283_v11  ;;  %v2498_v30 = vunpack.c.h.bf16 %v3831_v45 }
 0x513   : > { %v2253_v34 = vpack.c.bf16 %v3285_v26, %v3282_v3  ;;  %v2497_v3 = vunpack.c.l.bf16 %v3831_v45 }
 0x515   : > { %v3286_v4 = vpop.f32.mrb[108].mxu0  ;;  %3520 = vmatprep.mubr.bf16.mxu1 %v2253_v34  ;;  %v3832_v34 = vld [vmem:[%s4259_s25 + $0x10] sm:$0xff]  }
 0x516   : > { %v3287_v43 = vpop.f32.mrb[109].mxu0 }
 0x517   : > { %v3288_v18 = vadd.f32 %v3287_v43, %v3286_v4  ;;  %v3289_v17 = vpop.f32.mrb[110].mxu0  ;;  %v2495_v4 = vunpack.c.l.bf16 %v3832_v34 }
 0x518   : > { %v3290_v55 = vpop.f32.mrb[111].mxu0 }
 0x519   : > { %v3291_v28 = vadd.f32 %v3290_v55, %v3289_v17 }
 0x51b   : > { %v2254_v25 = vpack.c.bf16 %v3291_v28, %v3288_v18  ;;  %v2496_v18 = vunpack.c.h.bf16 %v3832_v34 }
 0x51d   : > { %3521 = vmatmul.mubr.bf16.gmra.mrb[116].mxu1 %v2254_v25 }
 0x566   : > { %v3292_v27 = vpop.f32.mrb[112].mxu0 }
 0x567   : > { %v3293_v24 = vpop.f32.mrb[113].mxu0 }
 0x568   : > { %v3294_v21 = vadd.f32 %v3293_v24, %v3292_v27  ;;  %v3295_v37 = vpop.f32.mrb[114].mxu0 }
 0x569   : > { %v3296_v52 = vpop.f32.mrb[115].mxu0 }
 0x56a   : > { %v3297_v54 = vadd.f32 %v3296_v52, %v3295_v37 }
 0x56c   : > { %v2255_v31 = vpack.c.bf16 %v3297_v54, %v3294_v21 }
 0x56e   : > { %3524 = vmatprep.mubr.bf16.mxu1 %v2255_v31 }
 0x56f   : > { %v3298_v29 = vpop.f32.mrb[116].mxu0 }
 0x570   : > { %v3299_v60 = vpop.f32.mrb[117].mxu0 }
 0x571   : > { %v3300_v42 = vadd.f32 %v3299_v60, %v3298_v29  ;;  %v3301_v44 = vpop.f32.mrb[118].mxu0  ;;  %v3833_v29 = vld [vmem:[%s4259_s25 + $0x28] sm:$0xff]  }
 0x572   : > { %v3302_v47 = vpop.f32.mrb[119].mxu0  ;;  %v2501_v60 = vunpack.c.l.bf16 %v3833_v29 }
 0x573   : > { %v3303_v0 = vadd.f32 %v3302_v47, %v3301_v44  ;;  %v2502_v44 = vunpack.c.h.bf16 %v3833_v29 }
 0x575   : > { %v2256_v10 = vpack.c.bf16 %v3303_v0, %v3300_v42  ;;  %v3834_v0 = vld [vmem:[%s4259_s25 + $0x20] sm:$0xff]  }
 0x577   : > { %v3304_v38 = vpop.f32.mrb[120].mxu0  ;;  %3525 = vmatmul.mubr.bf16.gmra.mrb[120].mxu1 %v2256_v10  ;;  %v2499_v10 = vunpack.c.l.bf16 %v3834_v0 }
 0x578   : > { %v3305_v49 = vpop.f32.mrb[121].mxu0 }
 0x579   : > { %v3306_v2 = vadd.f32 %v3305_v49, %v3304_v38  ;;  %v3307_v22 = vpop.f32.mrb[122].mxu0  ;;  %v2500_v49 = vunpack.c.h.bf16 %v3834_v0 }
 0x57a   : > { %v3308_v14 = vpop.f32.mrb[123].mxu0 }
 0x57b   : > { %v3309_v46 = vadd.f32 %v3308_v14, %v3307_v22 }
 0x57d   : > { %v2257_v41 = vpack.c.bf16 %v3309_v46, %v3306_v2 }
 0x57f   : > { %v3310_v39 = vpop.f32.mrb[124].mxu0  ;;  %3528 = vmatprep.mubr.bf16.mxu1 %v2257_v41 }
 0x580   : > { %v3311_v56 = vpop.f32.mrb[125].mxu0 }
 0x581   : > { %v3312_v58 = vadd.f32 %v3311_v56, %v3310_v39  ;;  %v3313_v51 = vpop.f32.mrb[126].mxu0 }
 0x582   : > { %v3314_v19 = vpop.f32.mrb[127].mxu0 }
 0x583   : > { %v3315_v57 = vadd.f32 %v3314_v19, %v3313_v51 }
 0x585   : > { %v2258_v40 = vpack.c.bf16 %v3315_v57, %v3312_v58 }
 0x587   : > { %3529 = vmatmul.mubr.bf16.gmra.mrb[124].mxu1 %v2258_v40  ;;  %v3835_v40 = vld [vmem:[%s4259_s25 + $0x38] sm:$0xff]  }
 0x588   : > { %v2506_v33 = vunpack.c.h.bf16 %v3835_v40 }
 0x5a0   : > { %v3502_v63 = vpop.f32.mrb[96].mxu1 }
 0x5a1   : > { %v2373_v5 = vadd.f32 %v3502_v63, %v5037_v7  ;;  %v2364_v50 = vpop.f32.mrb[97].mxu1  ;;  %v2505_v63 = vunpack.c.l.bf16 %v3835_v40 }
 0x5a2   : > { %v2365_v62 = vadd.f32 %v5037_v7, %v2364_v50  ;;  %v3503_v1 = vpop.f32.mrb[98].mxu1  ;;  %v3836_v50 = vld [vmem:[%s4259_s25 + $0x30] sm:$0xff]  }
 0x5a3   : > { %v2376_v20 = vadd.f32 %v3503_v1, %v5037_v7  ;;  %v2367_v15 = vpop.f32.mrb[99].mxu1  ;;  %v2525_v9 = vadd.f32 %v2493_v16, %v2373_v5  ;;  %v2504_v61 = vunpack.c.h.bf16 %v3836_v50 }
 0x5a4   : > { %v2368_v32 = vadd.f32 %v5037_v7, %v2367_v15  ;;  %v2523_v48 = vadd.f32 %v2491_v36, %v2365_v62 }
 0x5a5   : > { %v2526_v12 = vadd.f32 %v2494_v53, %v2376_v20  ;;  %v2503_v53 = vunpack.c.l.bf16 %v3836_v50 }
 0x5a6   : > { %v2524_v8 = vadd.f32 %v2492_v6, %v2368_v32 }
 0x5a7   : > { %v2997_v23 = vpack.c.bf16 %v2526_v12, %v2525_v9 }
 0x5a8   : > { %v2992_v35 = vpack.c.bf16 %v2524_v8, %v2523_v48 }
 0x5a9   : > { %3069 = vst [vmem:[%s5047_s16 + $0x8] sm:$0xff] %v2997_v23  }
 0x5aa   : > { %2993 = vst [vmem:[%s5047_s16] sm:$0xff] %v2992_v35   ;;  %v3837_v35 = vld [vmem:[%s4259_s25 + $0x48] sm:$0xff]  }
 0x5ab   : > { %v2510_v45 = vunpack.c.h.bf16 %v3837_v35 }
 0x5b0   : > { %v3506_v13 = vpop.f32.mrb[100].mxu1 }
 0x5b1   : > { %v2389_v59 = vadd.f32 %v3506_v13, %v5037_v7  ;;  %v2380_v11 = vpop.f32.mrb[101].mxu1  ;;  %v2509_v13 = vunpack.c.l.bf16 %v3837_v35 }
 0x5b2   : > { %v2381_v26 = vadd.f32 %v5037_v7, %v2380_v11  ;;  %v3507_v43 = vpop.f32.mrb[102].mxu1  ;;  %v3838_v11 = vld [vmem:[%s4259_s25 + $0x40] sm:$0xff]  }
 0x5b3   : > { %v2392_v17 = vadd.f32 %v3507_v43, %v5037_v7  ;;  %v2383_v55 = vpop.f32.mrb[103].mxu1  ;;  %v2529_v25 = vadd.f32 %v2497_v3, %v2389_v59  ;;  %v2508_v34 = vunpack.c.h.bf16 %v3838_v11 }
 0x5b4   : > { %v2384_v28 = vadd.f32 %v5037_v7, %v2383_v55  ;;  %v2527_v24 = vadd.f32 %v2495_v4, %v2381_v26 }
 0x5b5   : > { %v2530_v27 = vadd.f32 %v2498_v30, %v2392_v17  ;;  %v2507_v30 = vunpack.c.l.bf16 %v3838_v11 }
 0x5b6   : > { %v2528_v21 = vadd.f32 %v2496_v18, %v2384_v28 }
 0x5b7   : > { %v3007_v37 = vpack.c.bf16 %v2530_v27, %v2529_v25 }
 0x5b8   : > { %v3002_v52 = vpack.c.bf16 %v2528_v21, %v2527_v24 }
 0x5b9   : > { %3071 = vst [vmem:[%s5047_s16 + $0x18] sm:$0xff] %v3007_v37  }
 0x5ba   : > { %3070 = vst [vmem:[%s5047_s16 + $0x10] sm:$0xff] %v3002_v52   ;;  %v3839_v52 = vld [vmem:[%s4259_s25 + $0x58] sm:$0xff]  }
 0x5bb   : > { %v2514_v29 = vunpack.c.h.bf16 %v3839_v52 }
 0x5c0   : > { %v3510_v54 = vpop.f32.mrb[104].mxu1 }
 0x5c1   : > { %v2405_v31 = vadd.f32 %v3510_v54, %v5037_v7  ;;  %v2396_v42 = vpop.f32.mrb[105].mxu1  ;;  %v2513_v54 = vunpack.c.l.bf16 %v3839_v52 }
 0x5c2   : > { %v2397_v47 = vadd.f32 %v5037_v7, %v2396_v42  ;;  %v3511_v38 = vpop.f32.mrb[106].mxu1  ;;  %v3840_v42 = vld [vmem:[%s4259_s25 + $0x50] sm:$0xff]  }
 0x5c3   : > { %v2408_v2 = vadd.f32 %v3511_v38, %v5037_v7  ;;  %v2399_v22 = vpop.f32.mrb[107].mxu1  ;;  %v2533_v46 = vadd.f32 %v2501_v60, %v2405_v31  ;;  %v2512_v0 = vunpack.c.h.bf16 %v3840_v42 }
 0x5c4   : > { %v2400_v14 = vadd.f32 %v5037_v7, %v2399_v22  ;;  %v2531_v39 = vadd.f32 %v2499_v10, %v2397_v47 }
 0x5c5   : > { %v2534_v41 = vadd.f32 %v2502_v44, %v2408_v2  ;;  %v2511_v44 = vunpack.c.l.bf16 %v3840_v42 }
 0x5c6   : > { %v2532_v56 = vadd.f32 %v2500_v49, %v2400_v14 }
 0x5c7   : > { %v3017_v58 = vpack.c.bf16 %v2534_v41, %v2533_v46 }
 0x5c8   : > { %v3012_v51 = vpack.c.bf16 %v2532_v56, %v2531_v39 }
 0x5c9   : > { %3073 = vst [vmem:[%s5047_s16 + $0x28] sm:$0xff] %v3017_v58  }
 0x5ca   : > { %3072 = vst [vmem:[%s5047_s16 + $0x20] sm:$0xff] %v3012_v51   ;;  %v3841_v51 = vld [vmem:[%s4259_s25 + $0x68] sm:$0xff]  }
 0x5cb   : > { %v2518_v40 = vunpack.c.h.bf16 %v3841_v51 }
 0x5d0   : > { %v3514_v19 = vpop.f32.mrb[108].mxu1 }
 0x5d1   : > { %v2421_v57 = vadd.f32 %v3514_v19, %v5037_v7  ;;  %v2412_v5 = vpop.f32.mrb[109].mxu1  ;;  %v2517_v19 = vunpack.c.l.bf16 %v3841_v51 }
 0x5d2   : > { %v2413_v16 = vadd.f32 %v5037_v7, %v2412_v5  ;;  %v3515_v62 = vpop.f32.mrb[110].mxu1  ;;  %v3842_v5 = vld [vmem:[%s4259_s25 + $0x60] sm:$0xff]  }
 0x5d3   : > { %v2424_v36 = vadd.f32 %v3515_v62, %v5037_v7  ;;  %v2415_v1 = vpop.f32.mrb[111].mxu1  ;;  %v2537_v20 = vadd.f32 %v2505_v63, %v2421_v57  ;;  %v2516_v50 = vunpack.c.h.bf16 %v3842_v5 }
 0x5d4   : > { %v2416_v6 = vadd.f32 %v5037_v7, %v2415_v1  ;;  %v2535_v32 = vadd.f32 %v2503_v53, %v2413_v16 }
 0x5d5   : > { %v2538_v15 = vadd.f32 %v2506_v33, %v2424_v36  ;;  %v2515_v33 = vunpack.c.l.bf16 %v3842_v5 }
 0x5d6   : > { %v2536_v9 = vadd.f32 %v2504_v61, %v2416_v6 }
 0x5d7   : > { %v3027_v12 = vpack.c.bf16 %v2538_v15, %v2537_v20 }
 0x5d8   : > { %v3022_v48 = vpack.c.bf16 %v2536_v9, %v2535_v32 }
 0x5d9   : > { %3075 = vst [vmem:[%s5047_s16 + $0x38] sm:$0xff] %v3027_v12  }
 0x5da   : > { %3074 = vst [vmem:[%s5047_s16 + $0x30] sm:$0xff] %v3022_v48   ;;  %v3843_v48 = vld [vmem:[%s4259_s25 + $0x78] sm:$0xff]  }
 0x5db   : > { %v2522_v35 = vunpack.c.h.bf16 %v3843_v48 }
 0x5e0   : > { %v3518_v8 = vpop.f32.mrb[112].mxu1 }
 0x5e1   : > { %v2437_v23 = vadd.f32 %v3518_v8, %v5037_v7  ;;  %v2428_v59 = vpop.f32.mrb[113].mxu1  ;;  %v2521_v8 = vunpack.c.l.bf16 %v3843_v48 }
 0x5e2   : > { %v2429_v3 = vadd.f32 %v5037_v7, %v2428_v59  ;;  %v3519_v26 = vpop.f32.mrb[114].mxu1  ;;  %v3844_v59 = vld [vmem:[%s4259_s25 + $0x70] sm:$0xff]   ;;  %s5110_s25 = scalar_lea.hbm %s5168_s5, %s2988_s7 }
 0x5e3   : > { %v2440_v4 = vadd.f32 %v3519_v26, %v5037_v7  ;;  %v2431_v43 = vpop.f32.mrb[115].mxu1  ;;  %v2541_v17 = vadd.f32 %v2509_v13, %v2437_v23  ;;  %v2520_v11 = vunpack.c.h.bf16 %v3844_v59 }
 0x5e4   : > { %v2432_v18 = vadd.f32 %v5037_v7, %v2431_v43  ;;  %v2539_v28 = vadd.f32 %v2507_v30, %v2429_v3 }
 0x5e5   : > { %v2542_v55 = vadd.f32 %v2510_v45, %v2440_v4  ;;  %v2519_v45 = vunpack.c.l.bf16 %v3844_v59 }
 0x5e6   : > { %v2540_v25 = vadd.f32 %v2508_v34, %v2432_v18 }
 0x5e7   : > { %v3037_v27 = vpack.c.bf16 %v2542_v55, %v2541_v17 }
 0x5e8   : > { %v3032_v24 = vpack.c.bf16 %v2540_v25, %v2539_v28 }
 0x5e9   : > { %3077 = vst [vmem:[%s5047_s16 + $0x48] sm:$0xff] %v3037_v27  }
 0x5ea   : > { %3076 = vst [vmem:[%s5047_s16 + $0x40] sm:$0xff] %v3032_v24  }
 0x5f0   : > { %v3522_v21 = vpop.f32.mrb[116].mxu1 }
 0x5f1   : > { %v2453_v37 = vadd.f32 %v3522_v21, %v5037_v7  ;;  %v2444_v31 = vpop.f32.mrb[117].mxu1 }
 0x5f2   : > { %v2445_v60 = vadd.f32 %v5037_v7, %v2444_v31  ;;  %v3523_v47 = vpop.f32.mrb[118].mxu1 }
 0x5f3   : > { %v2456_v10 = vadd.f32 %v3523_v47, %v5037_v7  ;;  %v2447_v38 = vpop.f32.mrb[119].mxu1  ;;  %v2545_v2 = vadd.f32 %v2513_v54, %v2453_v37 }
 0x5f4   : > { %v2448_v49 = vadd.f32 %v5037_v7, %v2447_v38  ;;  %v2543_v14 = vadd.f32 %v2511_v44, %v2445_v60 }
 0x5f5   : > { %v2546_v22 = vadd.f32 %v2514_v29, %v2456_v10 }
 0x5f6   : > { %v2544_v46 = vadd.f32 %v2512_v0, %v2448_v49 }
 0x5f7   : > { %v3047_v41 = vpack.c.bf16 %v2546_v22, %v2545_v2 }
 0x5f8   : > { %v3042_v39 = vpack.c.bf16 %v2544_v46, %v2543_v14 }
 0x5f9   : > { %3079 = vst [vmem:[%s5047_s16 + $0x58] sm:$0xff] %v3047_v41  }
 0x5fa   : > { %3078 = vst [vmem:[%s5047_s16 + $0x50] sm:$0xff] %v3042_v39  }
 0x64a   : > { %v3526_v56 = vpop.f32.mrb[120].mxu1 }
 0x64b   : > { %v2469_v58 = vadd.f32 %v3526_v56, %v5037_v7  ;;  %v2460_v57 = vpop.f32.mrb[121].mxu1 }
 0x64c   : > { %v2461_v63 = vadd.f32 %v5037_v7, %v2460_v57  ;;  %v3527_v16 = vpop.f32.mrb[122].mxu1 }
 0x64d   : > { %v2472_v53 = vadd.f32 %v3527_v16, %v5037_v7  ;;  %v2463_v62 = vpop.f32.mrb[123].mxu1  ;;  %v2549_v36 = vadd.f32 %v2517_v19, %v2469_v58 }
 0x64e   : > { %v2464_v61 = vadd.f32 %v5037_v7, %v2463_v62  ;;  %v2547_v6 = vadd.f32 %v2515_v33, %v2461_v63 }
 0x64f   : > { %v2550_v1 = vadd.f32 %v2518_v40, %v2472_v53 }
 0x650   : > { %v2548_v20 = vadd.f32 %v2516_v50, %v2464_v61 }
 0x651   : > { %v3057_v15 = vpack.c.bf16 %v2550_v1, %v2549_v36 }
 0x652   : > { %v3052_v32 = vpack.c.bf16 %v2548_v20, %v2547_v6 }
 0x653   : > { %3081 = vst [vmem:[%s5047_s16 + $0x68] sm:$0xff] %v3057_v15  }
 0x654   : > { %3080 = vst [vmem:[%s5047_s16 + $0x60] sm:$0xff] %v3052_v32  }
 0x65a   : > { %v3530_v9 = vpop.f32.mrb[124].mxu1 }
 0x65b   : > { %v2485_v12 = vadd.f32 %v3530_v9, %v5037_v7  ;;  %v2476_v23 = vpop.f32.mrb[125].mxu1 }
 0x65c   : > { %v2477_v13 = vadd.f32 %v5037_v7, %v2476_v23  ;;  %v3531_v3 = vpop.f32.mrb[126].mxu1 }
 0x65d   : > { %v2488_v30 = vadd.f32 %v3531_v3, %v5037_v7  ;;  %v2479_v26 = vpop.f32.mrb[127].mxu1  ;;  %v2553_v4 = vadd.f32 %v2521_v8, %v2485_v12 }
 0x65e   : > { %v2480_v34 = vadd.f32 %v5037_v7, %v2479_v26  ;;  %v2551_v18 = vadd.f32 %v2519_v45, %v2477_v13 }
 0x65f   : > { %v2554_v43 = vadd.f32 %v2522_v35, %v2488_v30 }
 0x660   : > { %v2552_v17 = vadd.f32 %v2520_v11, %v2480_v34 }
 0x661   : > { %v3067_v55 = vpack.c.bf16 %v2554_v43, %v2553_v4 }
 0x662   : > { %v3062_v28 = vpack.c.bf16 %v2552_v17, %v2551_v18 }
 0x663   : > { %3083 = vst [vmem:[%s5047_s16 + $0x78] sm:$0xff] %v3067_v55  }
 0x664   : > { %3082 = vst [vmem:[%s5047_s16 + $0x70] sm:$0xff] %v3062_v28  }
 0x665   : > { %3944 = shalt.err (!%p3941_p11)
}
 0x666   : > { %s3945_s9 = scalar_lea.hbm %s5110_s25, 2048  ;;  %s3949_s10 = scalar_lea.hbm %s5168_s5, 4096 }
 0x667   : > { %p3946_p0 = scmp.ne.s32.totalorder %s5110_s25, %s3945_s9  ;;  %p3950_p6 = scmp.lt.u32.totalorder %s5110_s25, %s5168_s5 }
 0x668   : > { %p3951_p7 = scmp.lt.u32.totalorder %s3949_s10, %s3945_s9  ;;  %p3953_p8 = scmp.lt.u32.totalorder %s3945_s9, %s5110_s25 }
 0x669   : > { %p3947_p4 = pnand %p3946_p0, %p5238_p12 }
 0x66a   : > { %p3952_p2 = por %p3951_p7, %p3950_p6 }
 0x66b   : > { %p3948_p13 = pneg %p3947_p4 }
 0x66c   : > { %p3954_p1 = por %p3953_p8, %p3952_p2 }
 0x66e   : > { %p3955_p10 = pnand %p3954_p1, %p3948_p13 }
 0x670   : > { %3958 = shalt.err (!%p3955_p10)
}
 0x671   : > { %s4027_s27 = smov 64   ;;  %s4028_s15 = smov 4  }
 0x672   : > { %3542 = dma.vmem_to_hbm [thread:$0]  (%p5238_p12), %s5112_s14, 2048, %s5110_s25, %s2716_s21, %s4027_s27, %s4027_s27, %s4028_s15  }
 0x673 PF: > { %s2746_s26 = sand.u32 1, %s3997_s18   ;;  %p5239_p3 = scmp.ne.s32.totalorder %s5192_s29, 0 }
 0x674   : > { %p5240_p5 = scmp.ge.s32.totalorder %s4017_s23, 2  ;;  %s2747_s28 = scalar_lea.sflag [#allocation6], %s2746_s26 }
 0x676   : > { %p3556_p9 = pnand %p5240_p5, %p5239_p3 }
 0x678   : > { %3992 = dma.done.wait (!%p3556_p9), %s2747_s28, 2048  }
 0x679   : > { %3994 = vsyncadd (!%p3556_p9), %s2747_s28, 4294965248  ;;  %s22_s23 = sadd.s32 1, %s4017_s23   ;;  %s5241_s18 = smov %s4001_s19 }
 0x67a   : > { %p19_p11 = scmp.ge.s32.totalorder %s22_s23, 4   ;;  %s5242_s19 = smov %s4005_s20 }
 0x67b   : > { %s5243_s20 = smov %s4204_s17  ;;  %s5244_s21 = smov %s4013_s22 }
 0x67c   : > { %s5245_s22 = smov %s5247_s12  ;;  %21 = sbr.rel (!%p19_p11) target bundleno = 7 (0x7), region = 98 }
 0x683   :  { %2752 = vsyncpa [#allocation5], 1 }
 0x684   :  { %2754 = vsyncpa [#allocation5 + $0x1], 1 }
 0x685   :  { %2755 = vsyncpa [#allocation8], 1 }
 0x686   :  { %2756 = vsyncpa [#allocation6], 1 }
 0x687   :  { %2758 = vsyncpa [#allocation6 + $0x1], 1 }

</bundles_post_ra>
